<compile_context>
chip_gen: v5e
topology: v5e:2x2
jax: 0.10.0
libtpu: 0.0.40
codegen_flags: <defaults>
</compile_context>

<pallas_src>
import jax
import jax.numpy as jnp
from jax.experimental import pallas as pl
from jax.experimental.pallas import tpu as pltpu

# ---------------- small ViT config ----------------
IMG = 16            # image size
PATCH = 8           # patch size
CHANNELS = 3        # RGB, like the pretrained ViT
HIDDEN = 32         # hidden size
LAYERS = 2          # encoder layers
HEADS = 2           # attention heads
HEAD_DIM = HIDDEN // HEADS
MLP = 64            # intermediate size
NUM_PATCHES = (IMG // PATCH) ** 2      # 4
SEQ = NUM_PATCHES + 1                  # 5 (+1 CLS token)
SEQ_PAD = 8                            # padded to one sublane tile
CPP = CHANNELS * PATCH * PATCH         # 192
LN_EPS = 1e-12                         # HF ViT layer_norm_eps
ATT_SCALE = 1.0 / float(HEAD_DIM) ** 0.5
NEG_INF = -1e30


def _ln(x, g, b):
    mean = jnp.mean(x, axis=-1, keepdims=True)
    var = jnp.mean((x - mean) ** 2, axis=-1, keepdims=True)
    return (x - mean) * jax.lax.rsqrt(var + LN_EPS) * g + b


# ---------------- the fused per-image kernel ----------------
def _vit_kernel(patches_ref, patch_w_ref, embed_ref,
                ln1_g_ref, ln1_b_ref, qkv_w_ref, qkv_b_ref,
                o_w_ref, o_b_ref, ln2_g_ref, ln2_b_ref,
                fc1_w_ref, fc1_b_ref, fc2_w_ref, fc2_b_ref,
                lnf_g_ref, lnf_b_ref, cls_w_ref, cls_b_ref,
                out_ref):
    # ---- patch embedding + CLS/pos-embed/patch-bias slab (already padded to SEQ_PAD) ----
    patches = patches_ref[0]                        # [SEQ_PAD, CPP]; row 0 & pad rows are 0
    h = jnp.dot(patches, patch_w_ref[...], preferred_element_type=jnp.float32)
    h = h + embed_ref[...]                          # [SEQ_PAD, HIDDEN]

    # attention key mask: keys >= SEQ are padding tokens
    col_ids = jax.lax.broadcasted_iota(jnp.int32, (SEQ_PAD, SEQ_PAD), 1)
    key_mask = col_ids < SEQ

    # per-head lane masks over the HIDDEN axis (avoids sub-128 lane slicing)
    lane_ids = jax.lax.broadcasted_iota(jnp.int32, (SEQ_PAD, HIDDEN), 1)
    head_masks = [(lane_ids >= hh * HEAD_DIM) & (lane_ids < (hh + 1) * HEAD_DIM)
                  for hh in range(HEADS)]

    for layer in range(LAYERS):
        # ---- self-attention block (pre-LN) ----
        hn = _ln(h, ln1_g_ref[layer:layer + 1, :], ln1_b_ref[layer:layer + 1, :])
        q = (jnp.dot(hn, qkv_w_ref[layer, 0], preferred_element_type=jnp.float32)
             + qkv_b_ref[layer, 0:1, :])
        k = (jnp.dot(hn, qkv_w_ref[layer, 1], preferred_element_type=jnp.float32)
             + qkv_b_ref[layer, 1:2, :])
        v = (jnp.dot(hn, qkv_w_ref[layer, 2], preferred_element_type=jnp.float32)
             + qkv_b_ref[layer, 2:3, :])

        ctx = jnp.zeros((SEQ_PAD, HIDDEN), jnp.float32)
        for hh in range(HEADS):
            qm = jnp.where(head_masks[hh], q, 0.0)      # zero other head's channels
            vm = jnp.where(head_masks[hh], v, 0.0)
            # scores: contraction only picks up head hh's channels (qm zeroed elsewhere)
            s = jax.lax.dot_general(qm, k, (((1,), (1,)), ((), ())),
                                    preferred_element_type=jnp.float32) * ATT_SCALE
            s = jnp.where(key_mask, s, NEG_INF)
            m = jnp.max(s, axis=-1, keepdims=True)
            p = jnp.exp(s - m)
            denom = jnp.sum(p, axis=-1, keepdims=True)
            p = p * pl.reciprocal(denom, approx=True)
            # vm zeroed outside head hh -> this term fills only head hh's output columns
            ctx = ctx + jnp.dot(p, vm, preferred_element_type=jnp.float32)

        attn_out = (jnp.dot(ctx, o_w_ref[layer], preferred_element_type=jnp.float32)
                    + o_b_ref[layer:layer + 1, :])
        h = h + attn_out

        # ---- MLP block (pre-LN) ----
        hn = _ln(h, ln2_g_ref[layer:layer + 1, :], ln2_b_ref[layer:layer + 1, :])
        m1 = (jnp.dot(hn, fc1_w_ref[layer], preferred_element_type=jnp.float32)
              + fc1_b_ref[layer:layer + 1, :])
        # TODO(synk): HF ViT uses exact (erf) GELU; tanh-approx GELU used for safe TPU lowering.
        m1 = jax.nn.gelu(m1, approximate=True)
        m2 = (jnp.dot(m1, fc2_w_ref[layer], preferred_element_type=jnp.float32)
              + fc2_b_ref[layer:layer + 1, :])
        h = h + m2

    # ---- final LayerNorm + regression head on the CLS row only ----
    cls = _ln(h[0:1, :], lnf_g_ref[...], lnf_b_ref[...])                 # [1, HIDDEN]
    logit = jnp.sum(cls * cls_w_ref[...], axis=-1, keepdims=True) + cls_b_ref[...]
    out_ref[...] = (100.0 * jax.nn.sigmoid(logit)).reshape(1, 1, 1)


# ---------------- parameter init (deterministic, synthetic, pre-packed) ----------------
def init_params(key):
    keys = iter(jax.random.split(key, 64))

    def nrm(shape):
        return (0.02 * jax.random.normal(next(keys), shape)).astype(jnp.float32)

    patch_w = nrm((HIDDEN, CHANNELS, PATCH, PATCH))   # Conv2d weight layout
    patch_b = nrm((HIDDEN,))
    cls_token = nrm((1, 1, HIDDEN))
    pos_embed = nrm((1, SEQ, HIDDEN))

    # fold CLS token, positional embedding and patch bias into one additive slab
    embed = jnp.zeros((SEQ_PAD, HIDDEN), jnp.float32)
    embed = embed.at[0].set(cls_token[0, 0] + pos_embed[0, 0])
    embed = embed.at[1:SEQ].set(pos_embed[0, 1:] + patch_b[None, :])

    def layer_p():
        return dict(
            ln1_g=jnp.ones((HIDDEN,), jnp.float32),
            ln1_b=jnp.zeros((HIDDEN,), jnp.float32),
            qkv_w=jnp.stack([nrm((HIDDEN, HIDDEN)) for _ in range(3)], axis=0),  # [3,H,H]
            qkv_b=jnp.stack([nrm((HIDDEN,)) for _ in range(3)], axis=0),         # [3,H]
            o_w=nrm((HIDDEN, HIDDEN)), o_b=nrm((HIDDEN,)),
            ln2_g=jnp.ones((HIDDEN,), jnp.float32),
            ln2_b=jnp.zeros((HIDDEN,), jnp.float32),
            fc1_w=nrm((HIDDEN, MLP)), fc1_b=nrm((MLP,)),
            fc2_w=nrm((MLP, HIDDEN)), fc2_b=nrm((HIDDEN,)),
        )

    layers = [layer_p() for _ in range(LAYERS)]
    stack = lambda name: jnp.stack([lp[name] for lp in layers], axis=0)

    return {
        "patch_w": patch_w.reshape(HIDDEN, -1).T,     # [CPP, HIDDEN]
        "embed": embed,                               # [SEQ_PAD, HIDDEN]
        "ln1_g": stack("ln1_g"), "ln1_b": stack("ln1_b"),
        "qkv_w": stack("qkv_w"),                      # [LAYERS, 3, HIDDEN, HIDDEN]
        "qkv_b": stack("qkv_b"),                      # [LAYERS, 3, HIDDEN]
        "o_w": stack("o_w"), "o_b": stack("o_b"),
        "ln2_g": stack("ln2_g"), "ln2_b": stack("ln2_b"),
        "fc1_w": stack("fc1_w"), "fc1_b": stack("fc1_b"),
        "fc2_w": stack("fc2_w"), "fc2_b": stack("fc2_b"),
        "lnf_g": jnp.ones((1, HIDDEN), jnp.float32),
        "lnf_b": jnp.zeros((1, HIDDEN), jnp.float32),
        "cls_w": nrm((1, HIDDEN)),                    # nn.Linear(HIDDEN, 1) as row vector
        "cls_b": nrm((1, 1)),
    }


_WEIGHT_NAMES = ["patch_w", "embed", "ln1_g", "ln1_b", "qkv_w", "qkv_b", "o_w", "o_b",
                 "ln2_g", "ln2_b", "fc1_w", "fc1_b", "fc2_w", "fc2_b",
                 "lnf_g", "lnf_b", "cls_w", "cls_b"]


# ---------------- forward pass ----------------
def vit_regression_forward(params, pixel_values, labels=None):
    """Matches ViTRegressionModel.forward: returns values [B,1] (or (loss, values))."""
    b = pixel_values.shape[0]

    # im2col for Conv2d(k=stride=PATCH): [B, C, H, W] -> [B, NUM_PATCHES, C*P*P]
    x = pixel_values.reshape(b, CHANNELS, IMG // PATCH, PATCH, IMG // PATCH, PATCH)
    x = x.transpose(0, 2, 4, 1, 3, 5).reshape(b, NUM_PATCHES, CPP)
    # pad token axis to SEQ_PAD: row 0 = CLS slot, trailing rows = padding
    patches = jnp.pad(x, ((0, 0), (1, SEQ_PAD - 1 - NUM_PATCHES), (0, 0)))

    weights = [params[n] for n in _WEIGHT_NAMES]

    def full_spec(shape):
        return pl.BlockSpec(tuple(shape), lambda i: (0,) * len(shape))

    values = pl.pallas_call(
        _vit_kernel,
        out_shape=jax.ShapeDtypeStruct((b, 1, 1), jnp.float32),
        grid=(b,),
        in_specs=[pl.BlockSpec((1, SEQ_PAD, CPP), lambda i: (i, 0, 0))]
                 + [full_spec(w.shape) for w in weights],
        out_specs=pl.BlockSpec((1, 1, 1), lambda i: (i, 0, 0)),
        compiler_params=pltpu.CompilerParams(
            dimension_semantics=("parallel",)),
    )(patches, *weights)
    values = values.reshape(b, 1)

    if labels is not None:
        loss = jnp.mean((values.reshape(-1) - labels.reshape(-1)) ** 2)  # MSELoss
        return loss, values
    return values


if __name__ == "__main__":
    key = jax.random.PRNGKey(0)
    pkey, xkey = jax.random.split(key)

    params = init_params(pkey)
    pixel_values = jax.random.normal(xkey, (2, CHANNELS, IMG, IMG), dtype=jnp.float32)

    fwd = jax.jit(lambda p, x: vit_regression_forward(p, x))
    values = fwd(params, pixel_values)
    values = jax.block_until_ready(values)

    assert values.shape == (2, 1)
    assert bool(jnp.all(jnp.isfinite(values)))
    assert bool(jnp.all((values >= 0.0) & (values <= 100.0)))
    print("KERNEL_OK")
</pallas_src>

<mosaic_0001>
module attributes {stable_mosaic.version = 11 : i64} {
  func.func @_vit_kernel(%arg0: i32, %arg1: memref<1x8x192xf32, #tpu.memory_space<vmem>>, %arg2: memref<192x32xf32, #tpu.memory_space<vmem>>, %arg3: memref<8x32xf32, #tpu.memory_space<vmem>>, %arg4: memref<2x32xf32, #tpu.memory_space<vmem>>, %arg5: memref<2x32xf32, #tpu.memory_space<vmem>>, %arg6: memref<2x3x32x32xf32, #tpu.memory_space<vmem>>, %arg7: memref<2x3x32xf32, #tpu.memory_space<vmem>>, %arg8: memref<2x32x32xf32, #tpu.memory_space<vmem>>, %arg9: memref<2x32xf32, #tpu.memory_space<vmem>>, %arg10: memref<2x32xf32, #tpu.memory_space<vmem>>, %arg11: memref<2x32xf32, #tpu.memory_space<vmem>>, %arg12: memref<2x32x64xf32, #tpu.memory_space<vmem>>, %arg13: memref<2x64xf32, #tpu.memory_space<vmem>>, %arg14: memref<2x64x32xf32, #tpu.memory_space<vmem>>, %arg15: memref<2x32xf32, #tpu.memory_space<vmem>>, %arg16: memref<1x32xf32, #tpu.memory_space<vmem>>, %arg17: memref<1x32xf32, #tpu.memory_space<vmem>>, %arg18: memref<1x32xf32, #tpu.memory_space<vmem>>, %arg19: memref<1x1xf32, #tpu.memory_space<vmem>>, %arg20: memref<1x1x1xf32, #tpu.memory_space<vmem>>) attributes {dimension_semantics = [#tpu.dimension_semantics<parallel>], iteration_bounds = array<i64: 2>, scalar_prefetch = 0 : i64, scratch_operands = 0 : i64, tpu.core_type = #tpu.core_type<tc>, window_params = [{transform_indices = @transform_0, window_bounds = array<i64: 1, 8, 192>}, {pipeline_mode = #tpu.pipeline_mode<synchronous>, transform_indices = @transform_1, window_bounds = array<i64: 192, 32>}, {pipeline_mode = #tpu.pipeline_mode<synchronous>, transform_indices = @transform_2, window_bounds = array<i64: 8, 32>}, {pipeline_mode = #tpu.pipeline_mode<synchronous>, transform_indices = @transform_3, window_bounds = array<i64: 2, 32>}, {pipeline_mode = #tpu.pipeline_mode<synchronous>, transform_indices = @transform_4, window_bounds = array<i64: 2, 32>}, {pipeline_mode = #tpu.pipeline_mode<synchronous>, transform_indices = @transform_5, window_bounds = array<i64: 2, 3, 32, 32>}, {pipeline_mode = #tpu.pipeline_mode<synchronous>, transform_indices = @transform_6, window_bounds = array<i64: 2, 3, 32>}, {pipeline_mode = #tpu.pipeline_mode<synchronous>, transform_indices = @transform_7, window_bounds = array<i64: 2, 32, 32>}, {pipeline_mode = #tpu.pipeline_mode<synchronous>, transform_indices = @transform_8, window_bounds = array<i64: 2, 32>}, {pipeline_mode = #tpu.pipeline_mode<synchronous>, transform_indices = @transform_9, window_bounds = array<i64: 2, 32>}, {pipeline_mode = #tpu.pipeline_mode<synchronous>, transform_indices = @transform_10, window_bounds = array<i64: 2, 32>}, {pipeline_mode = #tpu.pipeline_mode<synchronous>, transform_indices = @transform_11, window_bounds = array<i64: 2, 32, 64>}, {pipeline_mode = #tpu.pipeline_mode<synchronous>, transform_indices = @transform_12, window_bounds = array<i64: 2, 64>}, {pipeline_mode = #tpu.pipeline_mode<synchronous>, transform_indices = @transform_13, window_bounds = array<i64: 2, 64, 32>}, {pipeline_mode = #tpu.pipeline_mode<synchronous>, transform_indices = @transform_14, window_bounds = array<i64: 2, 32>}, {pipeline_mode = #tpu.pipeline_mode<synchronous>, transform_indices = @transform_15, window_bounds = array<i64: 1, 32>}, {pipeline_mode = #tpu.pipeline_mode<synchronous>, transform_indices = @transform_16, window_bounds = array<i64: 1, 32>}, {pipeline_mode = #tpu.pipeline_mode<synchronous>, transform_indices = @transform_17, window_bounds = array<i64: 1, 32>}, {pipeline_mode = #tpu.pipeline_mode<synchronous>, transform_indices = @transform_18, window_bounds = array<i64: 1, 1>}, {transform_indices = @transform_19, window_bounds = array<i64: 1, 1, 1>}]} {
    %c0 = arith.constant 0 : index
    %c0_0 = arith.constant 0 : index
    %c0_1 = arith.constant 0 : index
    %0 = vector.load %arg1[%c0, %c0_0, %c0_1] : memref<1x8x192xf32, #tpu.memory_space<vmem>>, vector<1x8x192xf32>
    %1 = vector.shape_cast %0 : vector<1x8x192xf32> to vector<8x192xf32>
    %c0_2 = arith.constant 0 : index
    %c0_3 = arith.constant 0 : index
    %2 = vector.load %arg2[%c0_2, %c0_3] : memref<192x32xf32, #tpu.memory_space<vmem>>, vector<192x32xf32>
    %cst = arith.constant dense<0.000000e+00> : vector<8x32xf32>
    %3 = tpu.matmul %1, %2, %cst {dimension_numbers = #tpu.dot_dimension_numbers<[1], [0], [0], [1], [0, 0, 1, 1], [], []>} : vector<8x192xf32>, vector<192x32xf32>, vector<8x32xf32> -> vector<8x32xf32>
    %c0_4 = arith.constant 0 : index
    %c0_5 = arith.constant 0 : index
    %4 = vector.load %arg3[%c0_4, %c0_5] : memref<8x32xf32, #tpu.memory_space<vmem>>, vector<8x32xf32>
    %5 = arith.addf %3, %4 : vector<8x32xf32>
    %6 = tpu.iota {dimensions = array<i32: 1>} : vector<8x8xi32>
    %c5_i32 = arith.constant 5 : i32
    %7 = vector.broadcast %c5_i32 : i32 to vector<8x8xi32>
    %8 = arith.cmpi slt, %6, %7 : vector<8x8xi32>
    %9 = tpu.iota {dimensions = array<i32: 1>} : vector<8x32xi32>
    %c0_i32 = arith.constant 0 : i32
    %10 = vector.broadcast %c0_i32 : i32 to vector<8x32xi32>
    %11 = arith.cmpi sge, %9, %10 : vector<8x32xi32>
    %c16_i32 = arith.constant 16 : i32
    %12 = vector.broadcast %c16_i32 : i32 to vector<8x32xi32>
    %13 = arith.cmpi slt, %9, %12 : vector<8x32xi32>
    %14 = arith.andi %11, %13 : vector<8x32xi1>
    %c16_i32_6 = arith.constant 16 : i32
    %15 = vector.broadcast %c16_i32_6 : i32 to vector<8x32xi32>
    %16 = arith.cmpi sge, %9, %15 : vector<8x32xi32>
    %c32_i32 = arith.constant 32 : i32
    %17 = vector.broadcast %c32_i32 : i32 to vector<8x32xi32>
    %18 = arith.cmpi slt, %9, %17 : vector<8x32xi32>
    %19 = arith.andi %16, %18 : vector<8x32xi1>
    %c0_7 = arith.constant 0 : index
    %c0_8 = arith.constant 0 : index
    %20 = vector.load %arg4[%c0_7, %c0_8] : memref<2x32xf32, #tpu.memory_space<vmem>>, vector<1x32xf32>
    %c0_9 = arith.constant 0 : index
    %c0_10 = arith.constant 0 : index
    %21 = vector.load %arg5[%c0_9, %c0_10] : memref<2x32xf32, #tpu.memory_space<vmem>>, vector<1x32xf32>
    %cst_11 = arith.constant dense<0.000000e+00> : vector<8xf32>
    %22 = vector.multi_reduction <add>, %5, %cst_11 [1] : vector<8x32xf32> to vector<8xf32>
    %23 = vector.shape_cast %22 : vector<8xf32> to vector<8x1xf32>
    %cst_12 = arith.constant 3.200000e+01 : f32
    %24 = vector.broadcast %cst_12 : f32 to vector<8x1xf32>
    %25 = arith.divf %23, %24 : vector<8x1xf32>
    %26 = vector.broadcast %25 : vector<8x1xf32> to vector<8x32xf32>
    %27 = arith.subf %5, %26 : vector<8x32xf32>
    %28 = arith.mulf %27, %27 : vector<8x32xf32>
    %cst_13 = arith.constant dense<0.000000e+00> : vector<8xf32>
    %29 = vector.multi_reduction <add>, %28, %cst_13 [1] : vector<8x32xf32> to vector<8xf32>
    %30 = vector.shape_cast %29 : vector<8xf32> to vector<8x1xf32>
    %cst_14 = arith.constant 3.200000e+01 : f32
    %31 = vector.broadcast %cst_14 : f32 to vector<8x1xf32>
    %32 = arith.divf %30, %31 : vector<8x1xf32>
    %33 = vector.broadcast %25 : vector<8x1xf32> to vector<8x32xf32>
    %34 = arith.subf %5, %33 : vector<8x32xf32>
    %cst_15 = arith.constant 9.99999996E-13 : f32
    %35 = vector.broadcast %cst_15 : f32 to vector<8x1xf32>
    %36 = arith.addf %32, %35 : vector<8x1xf32>
    %37 = math.rsqrt %36 : vector<8x1xf32>
    %38 = vector.broadcast %37 : vector<8x1xf32> to vector<8x32xf32>
    %39 = arith.mulf %34, %38 : vector<8x32xf32>
    %40 = vector.broadcast %20 : vector<1x32xf32> to vector<8x32xf32>
    %41 = arith.mulf %39, %40 : vector<8x32xf32>
    %42 = vector.broadcast %21 : vector<1x32xf32> to vector<8x32xf32>
    %43 = arith.addf %41, %42 : vector<8x32xf32>
    %c0_16 = arith.constant 0 : index
    %c0_17 = arith.constant 0 : index
    %c0_18 = arith.constant 0 : index
    %c0_19 = arith.constant 0 : index
    %44 = vector.load %arg6[%c0_16, %c0_17, %c0_18, %c0_19] : memref<2x3x32x32xf32, #tpu.memory_space<vmem>>, vector<1x1x32x32xf32>
    %45 = vector.shape_cast %44 : vector<1x1x32x32xf32> to vector<32x32xf32>
    %cst_20 = arith.constant dense<0.000000e+00> : vector<8x32xf32>
    %46 = tpu.matmul %43, %45, %cst_20 {dimension_numbers = #tpu.dot_dimension_numbers<[1], [0], [0], [1], [0, 0, 1, 1], [], []>} : vector<8x32xf32>, vector<32x32xf32>, vector<8x32xf32> -> vector<8x32xf32>
    %c0_21 = arith.constant 0 : index
    %c0_22 = arith.constant 0 : index
    %c0_23 = arith.constant 0 : index
    %47 = vector.load %arg7[%c0_21, %c0_22, %c0_23] : memref<2x3x32xf32, #tpu.memory_space<vmem>>, vector<1x1x32xf32>
    %48 = vector.shape_cast %47 : vector<1x1x32xf32> to vector<1x32xf32>
    %49 = vector.broadcast %48 : vector<1x32xf32> to vector<8x32xf32>
    %50 = arith.addf %46, %49 : vector<8x32xf32>
    %c0_24 = arith.constant 0 : index
    %c1 = arith.constant 1 : index
    %c0_25 = arith.constant 0 : index
    %c0_26 = arith.constant 0 : index
    %51 = vector.load %arg6[%c0_24, %c1, %c0_25, %c0_26] : memref<2x3x32x32xf32, #tpu.memory_space<vmem>>, vector<1x1x32x32xf32>
    %52 = vector.shape_cast %51 : vector<1x1x32x32xf32> to vector<32x32xf32>
    %cst_27 = arith.constant dense<0.000000e+00> : vector<8x32xf32>
    %53 = tpu.matmul %43, %52, %cst_27 {dimension_numbers = #tpu.dot_dimension_numbers<[1], [0], [0], [1], [0, 0, 1, 1], [], []>} : vector<8x32xf32>, vector<32x32xf32>, vector<8x32xf32> -> vector<8x32xf32>
    %c0_28 = arith.constant 0 : index
    %c1_29 = arith.constant 1 : index
    %c0_30 = arith.constant 0 : index
    %54 = vector.load %arg7[%c0_28, %c1_29, %c0_30] : memref<2x3x32xf32, #tpu.memory_space<vmem>>, vector<1x1x32xf32>
    %55 = vector.shape_cast %54 : vector<1x1x32xf32> to vector<1x32xf32>
    %56 = vector.broadcast %55 : vector<1x32xf32> to vector<8x32xf32>
    %57 = arith.addf %53, %56 : vector<8x32xf32>
    %c0_31 = arith.constant 0 : index
    %c2 = arith.constant 2 : index
    %c0_32 = arith.constant 0 : index
    %c0_33 = arith.constant 0 : index
    %58 = vector.load %arg6[%c0_31, %c2, %c0_32, %c0_33] : memref<2x3x32x32xf32, #tpu.memory_space<vmem>>, vector<1x1x32x32xf32>
    %59 = vector.shape_cast %58 : vector<1x1x32x32xf32> to vector<32x32xf32>
    %cst_34 = arith.constant dense<0.000000e+00> : vector<8x32xf32>
    %60 = tpu.matmul %43, %59, %cst_34 {dimension_numbers = #tpu.dot_dimension_numbers<[1], [0], [0], [1], [0, 0, 1, 1], [], []>} : vector<8x32xf32>, vector<32x32xf32>, vector<8x32xf32> -> vector<8x32xf32>
    %c0_35 = arith.constant 0 : index
    %c2_36 = arith.constant 2 : index
    %c0_37 = arith.constant 0 : index
    %61 = vector.load %arg7[%c0_35, %c2_36, %c0_37] : memref<2x3x32xf32, #tpu.memory_space<vmem>>, vector<1x1x32xf32>
    %62 = vector.shape_cast %61 : vector<1x1x32xf32> to vector<1x32xf32>
    %63 = vector.broadcast %62 : vector<1x32xf32> to vector<8x32xf32>
    %64 = arith.addf %60, %63 : vector<8x32xf32>
    %cst_38 = arith.constant 0.000000e+00 : f32
    %65 = vector.broadcast %cst_38 : f32 to vector<8x32xf32>
    %cst_39 = arith.constant 0.000000e+00 : f32
    %66 = vector.broadcast %cst_39 : f32 to vector<8x32xf32>
    %67 = arith.select %14, %50, %66 : vector<8x32xi1>, vector<8x32xf32>
    %cst_40 = arith.constant 0.000000e+00 : f32
    %68 = vector.broadcast %cst_40 : f32 to vector<8x32xf32>
    %69 = arith.select %14, %64, %68 : vector<8x32xi1>, vector<8x32xf32>
    %cst_41 = arith.constant dense<0.000000e+00> : vector<8x8xf32>
    %70 = tpu.matmul %67, %57, %cst_41 {dimension_numbers = #tpu.dot_dimension_numbers<[1], [1], [0], [0], [0, 0, 1, 0], [], []>} : vector<8x32xf32>, vector<8x32xf32>, vector<8x8xf32> -> vector<8x8xf32>
    %cst_42 = arith.constant 2.500000e-01 : f32
    %71 = vector.broadcast %cst_42 : f32 to vector<8x8xf32>
    %72 = arith.mulf %70, %71 : vector<8x8xf32>
    %cst_43 = arith.constant -1.000000e+30 : f32
    %73 = vector.broadcast %cst_43 : f32 to vector<8x8xf32>
    %74 = arith.select %8, %72, %73 : vector<8x8xi1>, vector<8x8xf32>
    %cst_44 = arith.constant dense<0xFF800000> : vector<8xf32>
    %75 = vector.multi_reduction <maximumf>, %74, %cst_44 [1] : vector<8x8xf32> to vector<8xf32>
    %76 = vector.shape_cast %75 : vector<8xf32> to vector<8x1xf32>
    %77 = vector.broadcast %76 : vector<8x1xf32> to vector<8x8xf32>
    %78 = arith.subf %74, %77 : vector<8x8xf32>
    %79 = math.exp %78 : vector<8x8xf32>
    %cst_45 = arith.constant dense<0.000000e+00> : vector<8xf32>
    %80 = vector.multi_reduction <add>, %79, %cst_45 [1] : vector<8x8xf32> to vector<8xf32>
    %81 = vector.shape_cast %80 : vector<8xf32> to vector<8x1xf32>
    %82 = tpu.reciprocal %81 {approx = true} : vector<8x1xf32> -> vector<8x1xf32>
    %83 = vector.broadcast %82 : vector<8x1xf32> to vector<8x8xf32>
    %84 = arith.mulf %79, %83 : vector<8x8xf32>
    %cst_46 = arith.constant dense<0.000000e+00> : vector<8x32xf32>
    %85 = tpu.matmul %84, %69, %cst_46 {dimension_numbers = #tpu.dot_dimension_numbers<[1], [0], [0], [1], [0, 0, 1, 1], [], []>} : vector<8x8xf32>, vector<8x32xf32>, vector<8x32xf32> -> vector<8x32xf32>
    %86 = arith.addf %65, %85 : vector<8x32xf32>
    %cst_47 = arith.constant 0.000000e+00 : f32
    %87 = vector.broadcast %cst_47 : f32 to vector<8x32xf32>
    %88 = arith.select %19, %50, %87 : vector<8x32xi1>, vector<8x32xf32>
    %cst_48 = arith.constant 0.000000e+00 : f32
    %89 = vector.broadcast %cst_48 : f32 to vector<8x32xf32>
    %90 = arith.select %19, %64, %89 : vector<8x32xi1>, vector<8x32xf32>
    %cst_49 = arith.constant dense<0.000000e+00> : vector<8x8xf32>
    %91 = tpu.matmul %88, %57, %cst_49 {dimension_numbers = #tpu.dot_dimension_numbers<[1], [1], [0], [0], [0, 0, 1, 0], [], []>} : vector<8x32xf32>, vector<8x32xf32>, vector<8x8xf32> -> vector<8x8xf32>
    %cst_50 = arith.constant 2.500000e-01 : f32
    %92 = vector.broadcast %cst_50 : f32 to vector<8x8xf32>
    %93 = arith.mulf %91, %92 : vector<8x8xf32>
    %cst_51 = arith.constant -1.000000e+30 : f32
    %94 = vector.broadcast %cst_51 : f32 to vector<8x8xf32>
    %95 = arith.select %8, %93, %94 : vector<8x8xi1>, vector<8x8xf32>
    %cst_52 = arith.constant dense<0xFF800000> : vector<8xf32>
    %96 = vector.multi_reduction <maximumf>, %95, %cst_52 [1] : vector<8x8xf32> to vector<8xf32>
    %97 = vector.shape_cast %96 : vector<8xf32> to vector<8x1xf32>
    %98 = vector.broadcast %97 : vector<8x1xf32> to vector<8x8xf32>
    %99 = arith.subf %95, %98 : vector<8x8xf32>
    %100 = math.exp %99 : vector<8x8xf32>
    %cst_53 = arith.constant dense<0.000000e+00> : vector<8xf32>
    %101 = vector.multi_reduction <add>, %100, %cst_53 [1] : vector<8x8xf32> to vector<8xf32>
    %102 = vector.shape_cast %101 : vector<8xf32> to vector<8x1xf32>
    %103 = tpu.reciprocal %102 {approx = true} : vector<8x1xf32> -> vector<8x1xf32>
    %104 = vector.broadcast %103 : vector<8x1xf32> to vector<8x8xf32>
    %105 = arith.mulf %100, %104 : vector<8x8xf32>
    %cst_54 = arith.constant dense<0.000000e+00> : vector<8x32xf32>
    %106 = tpu.matmul %105, %90, %cst_54 {dimension_numbers = #tpu.dot_dimension_numbers<[1], [0], [0], [1], [0, 0, 1, 1], [], []>} : vector<8x8xf32>, vector<8x32xf32>, vector<8x32xf32> -> vector<8x32xf32>
    %107 = arith.addf %86, %106 : vector<8x32xf32>
    %c0_55 = arith.constant 0 : index
    %c0_56 = arith.constant 0 : index
    %c0_57 = arith.constant 0 : index
    %108 = vector.load %arg8[%c0_55, %c0_56, %c0_57] : memref<2x32x32xf32, #tpu.memory_space<vmem>>, vector<1x32x32xf32>
    %109 = vector.shape_cast %108 : vector<1x32x32xf32> to vector<32x32xf32>
    %cst_58 = arith.constant dense<0.000000e+00> : vector<8x32xf32>
    %110 = tpu.matmul %107, %109, %cst_58 {dimension_numbers = #tpu.dot_dimension_numbers<[1], [0], [0], [1], [0, 0, 1, 1], [], []>} : vector<8x32xf32>, vector<32x32xf32>, vector<8x32xf32> -> vector<8x32xf32>
    %c0_59 = arith.constant 0 : index
    %c0_60 = arith.constant 0 : index
    %111 = vector.load %arg9[%c0_59, %c0_60] : memref<2x32xf32, #tpu.memory_space<vmem>>, vector<1x32xf32>
    %112 = vector.broadcast %111 : vector<1x32xf32> to vector<8x32xf32>
    %113 = arith.addf %110, %112 : vector<8x32xf32>
    %114 = arith.addf %5, %113 : vector<8x32xf32>
    %c0_61 = arith.constant 0 : index
    %c0_62 = arith.constant 0 : index
    %115 = vector.load %arg10[%c0_61, %c0_62] : memref<2x32xf32, #tpu.memory_space<vmem>>, vector<1x32xf32>
    %c0_63 = arith.constant 0 : index
    %c0_64 = arith.constant 0 : index
    %116 = vector.load %arg11[%c0_63, %c0_64] : memref<2x32xf32, #tpu.memory_space<vmem>>, vector<1x32xf32>
    %cst_65 = arith.constant dense<0.000000e+00> : vector<8xf32>
    %117 = vector.multi_reduction <add>, %114, %cst_65 [1] : vector<8x32xf32> to vector<8xf32>
    %118 = vector.shape_cast %117 : vector<8xf32> to vector<8x1xf32>
    %cst_66 = arith.constant 3.200000e+01 : f32
    %119 = vector.broadcast %cst_66 : f32 to vector<8x1xf32>
    %120 = arith.divf %118, %119 : vector<8x1xf32>
    %121 = vector.broadcast %120 : vector<8x1xf32> to vector<8x32xf32>
    %122 = arith.subf %114, %121 : vector<8x32xf32>
    %123 = arith.mulf %122, %122 : vector<8x32xf32>
    %cst_67 = arith.constant dense<0.000000e+00> : vector<8xf32>
    %124 = vector.multi_reduction <add>, %123, %cst_67 [1] : vector<8x32xf32> to vector<8xf32>
    %125 = vector.shape_cast %124 : vector<8xf32> to vector<8x1xf32>
    %cst_68 = arith.constant 3.200000e+01 : f32
    %126 = vector.broadcast %cst_68 : f32 to vector<8x1xf32>
    %127 = arith.divf %125, %126 : vector<8x1xf32>
    %128 = vector.broadcast %120 : vector<8x1xf32> to vector<8x32xf32>
    %129 = arith.subf %114, %128 : vector<8x32xf32>
    %cst_69 = arith.constant 9.99999996E-13 : f32
    %130 = vector.broadcast %cst_69 : f32 to vector<8x1xf32>
    %131 = arith.addf %127, %130 : vector<8x1xf32>
    %132 = math.rsqrt %131 : vector<8x1xf32>
    %133 = vector.broadcast %132 : vector<8x1xf32> to vector<8x32xf32>
    %134 = arith.mulf %129, %133 : vector<8x32xf32>
    %135 = vector.broadcast %115 : vector<1x32xf32> to vector<8x32xf32>
    %136 = arith.mulf %134, %135 : vector<8x32xf32>
    %137 = vector.broadcast %116 : vector<1x32xf32> to vector<8x32xf32>
    %138 = arith.addf %136, %137 : vector<8x32xf32>
    %c0_70 = arith.constant 0 : index
    %c0_71 = arith.constant 0 : index
    %c0_72 = arith.constant 0 : index
    %139 = vector.load %arg12[%c0_70, %c0_71, %c0_72] : memref<2x32x64xf32, #tpu.memory_space<vmem>>, vector<1x32x64xf32>
    %140 = vector.shape_cast %139 : vector<1x32x64xf32> to vector<32x64xf32>
    %cst_73 = arith.constant dense<0.000000e+00> : vector<8x64xf32>
    %141 = tpu.matmul %138, %140, %cst_73 {dimension_numbers = #tpu.dot_dimension_numbers<[1], [0], [0], [1], [0, 0, 1, 1], [], []>} : vector<8x32xf32>, vector<32x64xf32>, vector<8x64xf32> -> vector<8x64xf32>
    %c0_74 = arith.constant 0 : index
    %c0_75 = arith.constant 0 : index
    %142 = vector.load %arg13[%c0_74, %c0_75] : memref<2x64xf32, #tpu.memory_space<vmem>>, vector<1x64xf32>
    %143 = vector.broadcast %142 : vector<1x64xf32> to vector<8x64xf32>
    %144 = arith.addf %141, %143 : vector<8x64xf32>
    %145 = arith.mulf %144, %144 : vector<8x64xf32>
    %146 = arith.mulf %144, %145 : vector<8x64xf32>
    %cst_76 = arith.constant 4.471500e-02 : f32
    %147 = vector.broadcast %cst_76 : f32 to vector<8x64xf32>
    %148 = arith.mulf %147, %146 : vector<8x64xf32>
    %149 = arith.addf %144, %148 : vector<8x64xf32>
    %cst_77 = arith.constant 0.797884583 : f32
    %150 = vector.broadcast %cst_77 : f32 to vector<8x64xf32>
    %151 = arith.mulf %150, %149 : vector<8x64xf32>
    %152 = math.tanh %151 : vector<8x64xf32>
    %cst_78 = arith.constant 1.000000e+00 : f32
    %153 = vector.broadcast %cst_78 : f32 to vector<8x64xf32>
    %154 = arith.addf %153, %152 : vector<8x64xf32>
    %cst_79 = arith.constant 5.000000e-01 : f32
    %155 = vector.broadcast %cst_79 : f32 to vector<8x64xf32>
    %156 = arith.mulf %155, %154 : vector<8x64xf32>
    %157 = arith.mulf %144, %156 : vector<8x64xf32>
    %c0_80 = arith.constant 0 : index
    %c0_81 = arith.constant 0 : index
    %c0_82 = arith.constant 0 : index
    %158 = vector.load %arg14[%c0_80, %c0_81, %c0_82] : memref<2x64x32xf32, #tpu.memory_space<vmem>>, vector<1x64x32xf32>
    %159 = vector.shape_cast %158 : vector<1x64x32xf32> to vector<64x32xf32>
    %cst_83 = arith.constant dense<0.000000e+00> : vector<8x32xf32>
    %160 = tpu.matmul %157, %159, %cst_83 {dimension_numbers = #tpu.dot_dimension_numbers<[1], [0], [0], [1], [0, 0, 1, 1], [], []>} : vector<8x64xf32>, vector<64x32xf32>, vector<8x32xf32> -> vector<8x32xf32>
    %c0_84 = arith.constant 0 : index
    %c0_85 = arith.constant 0 : index
    %161 = vector.load %arg15[%c0_84, %c0_85] : memref<2x32xf32, #tpu.memory_space<vmem>>, vector<1x32xf32>
    %162 = vector.broadcast %161 : vector<1x32xf32> to vector<8x32xf32>
    %163 = arith.addf %160, %162 : vector<8x32xf32>
    %164 = arith.addf %114, %163 : vector<8x32xf32>
    %c1_86 = arith.constant 1 : index
    %c0_87 = arith.constant 0 : index
    %165 = vector.load %arg4[%c1_86, %c0_87] : memref<2x32xf32, #tpu.memory_space<vmem>>, vector<1x32xf32>
    %c1_88 = arith.constant 1 : index
    %c0_89 = arith.constant 0 : index
    %166 = vector.load %arg5[%c1_88, %c0_89] : memref<2x32xf32, #tpu.memory_space<vmem>>, vector<1x32xf32>
    %cst_90 = arith.constant dense<0.000000e+00> : vector<8xf32>
    %167 = vector.multi_reduction <add>, %164, %cst_90 [1] : vector<8x32xf32> to vector<8xf32>
    %168 = vector.shape_cast %167 : vector<8xf32> to vector<8x1xf32>
    %cst_91 = arith.constant 3.200000e+01 : f32
    %169 = vector.broadcast %cst_91 : f32 to vector<8x1xf32>
    %170 = arith.divf %168, %169 : vector<8x1xf32>
    %171 = vector.broadcast %170 : vector<8x1xf32> to vector<8x32xf32>
    %172 = arith.subf %164, %171 : vector<8x32xf32>
    %173 = arith.mulf %172, %172 : vector<8x32xf32>
    %cst_92 = arith.constant dense<0.000000e+00> : vector<8xf32>
    %174 = vector.multi_reduction <add>, %173, %cst_92 [1] : vector<8x32xf32> to vector<8xf32>
    %175 = vector.shape_cast %174 : vector<8xf32> to vector<8x1xf32>
    %cst_93 = arith.constant 3.200000e+01 : f32
    %176 = vector.broadcast %cst_93 : f32 to vector<8x1xf32>
    %177 = arith.divf %175, %176 : vector<8x1xf32>
    %178 = vector.broadcast %170 : vector<8x1xf32> to vector<8x32xf32>
    %179 = arith.subf %164, %178 : vector<8x32xf32>
    %cst_94 = arith.constant 9.99999996E-13 : f32
    %180 = vector.broadcast %cst_94 : f32 to vector<8x1xf32>
    %181 = arith.addf %177, %180 : vector<8x1xf32>
    %182 = math.rsqrt %181 : vector<8x1xf32>
    %183 = vector.broadcast %182 : vector<8x1xf32> to vector<8x32xf32>
    %184 = arith.mulf %179, %183 : vector<8x32xf32>
    %185 = vector.broadcast %165 : vector<1x32xf32> to vector<8x32xf32>
    %186 = arith.mulf %184, %185 : vector<8x32xf32>
    %187 = vector.broadcast %166 : vector<1x32xf32> to vector<8x32xf32>
    %188 = arith.addf %186, %187 : vector<8x32xf32>
    %c1_95 = arith.constant 1 : index
    %c0_96 = arith.constant 0 : index
    %c0_97 = arith.constant 0 : index
    %c0_98 = arith.constant 0 : index
    %189 = vector.load %arg6[%c1_95, %c0_96, %c0_97, %c0_98] : memref<2x3x32x32xf32, #tpu.memory_space<vmem>>, vector<1x1x32x32xf32>
    %190 = vector.shape_cast %189 : vector<1x1x32x32xf32> to vector<32x32xf32>
    %cst_99 = arith.constant dense<0.000000e+00> : vector<8x32xf32>
    %191 = tpu.matmul %188, %190, %cst_99 {dimension_numbers = #tpu.dot_dimension_numbers<[1], [0], [0], [1], [0, 0, 1, 1], [], []>} : vector<8x32xf32>, vector<32x32xf32>, vector<8x32xf32> -> vector<8x32xf32>
    %c1_100 = arith.constant 1 : index
    %c0_101 = arith.constant 0 : index
    %c0_102 = arith.constant 0 : index
    %192 = vector.load %arg7[%c1_100, %c0_101, %c0_102] : memref<2x3x32xf32, #tpu.memory_space<vmem>>, vector<1x1x32xf32>
    %193 = vector.shape_cast %192 : vector<1x1x32xf32> to vector<1x32xf32>
    %194 = vector.broadcast %193 : vector<1x32xf32> to vector<8x32xf32>
    %195 = arith.addf %191, %194 : vector<8x32xf32>
    %c1_103 = arith.constant 1 : index
    %c1_104 = arith.constant 1 : index
    %c0_105 = arith.constant 0 : index
    %c0_106 = arith.constant 0 : index
    %196 = vector.load %arg6[%c1_103, %c1_104, %c0_105, %c0_106] : memref<2x3x32x32xf32, #tpu.memory_space<vmem>>, vector<1x1x32x32xf32>
    %197 = vector.shape_cast %196 : vector<1x1x32x32xf32> to vector<32x32xf32>
    %cst_107 = arith.constant dense<0.000000e+00> : vector<8x32xf32>
    %198 = tpu.matmul %188, %197, %cst_107 {dimension_numbers = #tpu.dot_dimension_numbers<[1], [0], [0], [1], [0, 0, 1, 1], [], []>} : vector<8x32xf32>, vector<32x32xf32>, vector<8x32xf32> -> vector<8x32xf32>
    %c1_108 = arith.constant 1 : index
    %c1_109 = arith.constant 1 : index
    %c0_110 = arith.constant 0 : index
    %199 = vector.load %arg7[%c1_108, %c1_109, %c0_110] : memref<2x3x32xf32, #tpu.memory_space<vmem>>, vector<1x1x32xf32>
    %200 = vector.shape_cast %199 : vector<1x1x32xf32> to vector<1x32xf32>
    %201 = vector.broadcast %200 : vector<1x32xf32> to vector<8x32xf32>
    %202 = arith.addf %198, %201 : vector<8x32xf32>
    %c1_111 = arith.constant 1 : index
    %c2_112 = arith.constant 2 : index
    %c0_113 = arith.constant 0 : index
    %c0_114 = arith.constant 0 : index
    %203 = vector.load %arg6[%c1_111, %c2_112, %c0_113, %c0_114] : memref<2x3x32x32xf32, #tpu.memory_space<vmem>>, vector<1x1x32x32xf32>
    %204 = vector.shape_cast %203 : vector<1x1x32x32xf32> to vector<32x32xf32>
    %cst_115 = arith.constant dense<0.000000e+00> : vector<8x32xf32>
    %205 = tpu.matmul %188, %204, %cst_115 {dimension_numbers = #tpu.dot_dimension_numbers<[1], [0], [0], [1], [0, 0, 1, 1], [], []>} : vector<8x32xf32>, vector<32x32xf32>, vector<8x32xf32> -> vector<8x32xf32>
    %c1_116 = arith.constant 1 : index
    %c2_117 = arith.constant 2 : index
    %c0_118 = arith.constant 0 : index
    %206 = vector.load %arg7[%c1_116, %c2_117, %c0_118] : memref<2x3x32xf32, #tpu.memory_space<vmem>>, vector<1x1x32xf32>
    %207 = vector.shape_cast %206 : vector<1x1x32xf32> to vector<1x32xf32>
    %208 = vector.broadcast %207 : vector<1x32xf32> to vector<8x32xf32>
    %209 = arith.addf %205, %208 : vector<8x32xf32>
    %cst_119 = arith.constant 0.000000e+00 : f32
    %210 = vector.broadcast %cst_119 : f32 to vector<8x32xf32>
    %cst_120 = arith.constant 0.000000e+00 : f32
    %211 = vector.broadcast %cst_120 : f32 to vector<8x32xf32>
    %212 = arith.select %14, %195, %211 : vector<8x32xi1>, vector<8x32xf32>
    %cst_121 = arith.constant 0.000000e+00 : f32
    %213 = vector.broadcast %cst_121 : f32 to vector<8x32xf32>
    %214 = arith.select %14, %209, %213 : vector<8x32xi1>, vector<8x32xf32>
    %cst_122 = arith.constant dense<0.000000e+00> : vector<8x8xf32>
    %215 = tpu.matmul %212, %202, %cst_122 {dimension_numbers = #tpu.dot_dimension_numbers<[1], [1], [0], [0], [0, 0, 1, 0], [], []>} : vector<8x32xf32>, vector<8x32xf32>, vector<8x8xf32> -> vector<8x8xf32>
    %cst_123 = arith.constant 2.500000e-01 : f32
    %216 = vector.broadcast %cst_123 : f32 to vector<8x8xf32>
    %217 = arith.mulf %215, %216 : vector<8x8xf32>
    %cst_124 = arith.constant -1.000000e+30 : f32
    %218 = vector.broadcast %cst_124 : f32 to vector<8x8xf32>
    %219 = arith.select %8, %217, %218 : vector<8x8xi1>, vector<8x8xf32>
    %cst_125 = arith.constant dense<0xFF800000> : vector<8xf32>
    %220 = vector.multi_reduction <maximumf>, %219, %cst_125 [1] : vector<8x8xf32> to vector<8xf32>
    %221 = vector.shape_cast %220 : vector<8xf32> to vector<8x1xf32>
    %222 = vector.broadcast %221 : vector<8x1xf32> to vector<8x8xf32>
    %223 = arith.subf %219, %222 : vector<8x8xf32>
    %224 = math.exp %223 : vector<8x8xf32>
    %cst_126 = arith.constant dense<0.000000e+00> : vector<8xf32>
    %225 = vector.multi_reduction <add>, %224, %cst_126 [1] : vector<8x8xf32> to vector<8xf32>
    %226 = vector.shape_cast %225 : vector<8xf32> to vector<8x1xf32>
    %227 = tpu.reciprocal %226 {approx = true} : vector<8x1xf32> -> vector<8x1xf32>
    %228 = vector.broadcast %227 : vector<8x1xf32> to vector<8x8xf32>
    %229 = arith.mulf %224, %228 : vector<8x8xf32>
    %cst_127 = arith.constant dense<0.000000e+00> : vector<8x32xf32>
    %230 = tpu.matmul %229, %214, %cst_127 {dimension_numbers = #tpu.dot_dimension_numbers<[1], [0], [0], [1], [0, 0, 1, 1], [], []>} : vector<8x8xf32>, vector<8x32xf32>, vector<8x32xf32> -> vector<8x32xf32>
    %231 = arith.addf %210, %230 : vector<8x32xf32>
    %cst_128 = arith.constant 0.000000e+00 : f32
    %232 = vector.broadcast %cst_128 : f32 to vector<8x32xf32>
    %233 = arith.select %19, %195, %232 : vector<8x32xi1>, vector<8x32xf32>
    %cst_129 = arith.constant 0.000000e+00 : f32
    %234 = vector.broadcast %cst_129 : f32 to vector<8x32xf32>
    %235 = arith.select %19, %209, %234 : vector<8x32xi1>, vector<8x32xf32>
    %cst_130 = arith.constant dense<0.000000e+00> : vector<8x8xf32>
    %236 = tpu.matmul %233, %202, %cst_130 {dimension_numbers = #tpu.dot_dimension_numbers<[1], [1], [0], [0], [0, 0, 1, 0], [], []>} : vector<8x32xf32>, vector<8x32xf32>, vector<8x8xf32> -> vector<8x8xf32>
    %cst_131 = arith.constant 2.500000e-01 : f32
    %237 = vector.broadcast %cst_131 : f32 to vector<8x8xf32>
    %238 = arith.mulf %236, %237 : vector<8x8xf32>
    %cst_132 = arith.constant -1.000000e+30 : f32
    %239 = vector.broadcast %cst_132 : f32 to vector<8x8xf32>
    %240 = arith.select %8, %238, %239 : vector<8x8xi1>, vector<8x8xf32>
    %cst_133 = arith.constant dense<0xFF800000> : vector<8xf32>
    %241 = vector.multi_reduction <maximumf>, %240, %cst_133 [1] : vector<8x8xf32> to vector<8xf32>
    %242 = vector.shape_cast %241 : vector<8xf32> to vector<8x1xf32>
    %243 = vector.broadcast %242 : vector<8x1xf32> to vector<8x8xf32>
    %244 = arith.subf %240, %243 : vector<8x8xf32>
    %245 = math.exp %244 : vector<8x8xf32>
    %cst_134 = arith.constant dense<0.000000e+00> : vector<8xf32>
    %246 = vector.multi_reduction <add>, %245, %cst_134 [1] : vector<8x8xf32> to vector<8xf32>
    %247 = vector.shape_cast %246 : vector<8xf32> to vector<8x1xf32>
    %248 = tpu.reciprocal %247 {approx = true} : vector<8x1xf32> -> vector<8x1xf32>
    %249 = vector.broadcast %248 : vector<8x1xf32> to vector<8x8xf32>
    %250 = arith.mulf %245, %249 : vector<8x8xf32>
    %cst_135 = arith.constant dense<0.000000e+00> : vector<8x32xf32>
    %251 = tpu.matmul %250, %235, %cst_135 {dimension_numbers = #tpu.dot_dimension_numbers<[1], [0], [0], [1], [0, 0, 1, 1], [], []>} : vector<8x8xf32>, vector<8x32xf32>, vector<8x32xf32> -> vector<8x32xf32>
    %252 = arith.addf %231, %251 : vector<8x32xf32>
    %c1_136 = arith.constant 1 : index
    %c0_137 = arith.constant 0 : index
    %c0_138 = arith.constant 0 : index
    %253 = vector.load %arg8[%c1_136, %c0_137, %c0_138] : memref<2x32x32xf32, #tpu.memory_space<vmem>>, vector<1x32x32xf32>
    %254 = vector.shape_cast %253 : vector<1x32x32xf32> to vector<32x32xf32>
    %cst_139 = arith.constant dense<0.000000e+00> : vector<8x32xf32>
    %255 = tpu.matmul %252, %254, %cst_139 {dimension_numbers = #tpu.dot_dimension_numbers<[1], [0], [0], [1], [0, 0, 1, 1], [], []>} : vector<8x32xf32>, vector<32x32xf32>, vector<8x32xf32> -> vector<8x32xf32>
    %c1_140 = arith.constant 1 : index
    %c0_141 = arith.constant 0 : index
    %256 = vector.load %arg9[%c1_140, %c0_141] : memref<2x32xf32, #tpu.memory_space<vmem>>, vector<1x32xf32>
    %257 = vector.broadcast %256 : vector<1x32xf32> to vector<8x32xf32>
    %258 = arith.addf %255, %257 : vector<8x32xf32>
    %259 = arith.addf %164, %258 : vector<8x32xf32>
    %c1_142 = arith.constant 1 : index
    %c0_143 = arith.constant 0 : index
    %260 = vector.load %arg10[%c1_142, %c0_143] : memref<2x32xf32, #tpu.memory_space<vmem>>, vector<1x32xf32>
    %c1_144 = arith.constant 1 : index
    %c0_145 = arith.constant 0 : index
    %261 = vector.load %arg11[%c1_144, %c0_145] : memref<2x32xf32, #tpu.memory_space<vmem>>, vector<1x32xf32>
    %cst_146 = arith.constant dense<0.000000e+00> : vector<8xf32>
    %262 = vector.multi_reduction <add>, %259, %cst_146 [1] : vector<8x32xf32> to vector<8xf32>
    %263 = vector.shape_cast %262 : vector<8xf32> to vector<8x1xf32>
    %cst_147 = arith.constant 3.200000e+01 : f32
    %264 = vector.broadcast %cst_147 : f32 to vector<8x1xf32>
    %265 = arith.divf %263, %264 : vector<8x1xf32>
    %266 = vector.broadcast %265 : vector<8x1xf32> to vector<8x32xf32>
    %267 = arith.subf %259, %266 : vector<8x32xf32>
    %268 = arith.mulf %267, %267 : vector<8x32xf32>
    %cst_148 = arith.constant dense<0.000000e+00> : vector<8xf32>
    %269 = vector.multi_reduction <add>, %268, %cst_148 [1] : vector<8x32xf32> to vector<8xf32>
    %270 = vector.shape_cast %269 : vector<8xf32> to vector<8x1xf32>
    %cst_149 = arith.constant 3.200000e+01 : f32
    %271 = vector.broadcast %cst_149 : f32 to vector<8x1xf32>
    %272 = arith.divf %270, %271 : vector<8x1xf32>
    %273 = vector.broadcast %265 : vector<8x1xf32> to vector<8x32xf32>
    %274 = arith.subf %259, %273 : vector<8x32xf32>
    %cst_150 = arith.constant 9.99999996E-13 : f32
    %275 = vector.broadcast %cst_150 : f32 to vector<8x1xf32>
    %276 = arith.addf %272, %275 : vector<8x1xf32>
    %277 = math.rsqrt %276 : vector<8x1xf32>
    %278 = vector.broadcast %277 : vector<8x1xf32> to vector<8x32xf32>
    %279 = arith.mulf %274, %278 : vector<8x32xf32>
    %280 = vector.broadcast %260 : vector<1x32xf32> to vector<8x32xf32>
    %281 = arith.mulf %279, %280 : vector<8x32xf32>
    %282 = vector.broadcast %261 : vector<1x32xf32> to vector<8x32xf32>
    %283 = arith.addf %281, %282 : vector<8x32xf32>
    %c1_151 = arith.constant 1 : index
    %c0_152 = arith.constant 0 : index
    %c0_153 = arith.constant 0 : index
    %284 = vector.load %arg12[%c1_151, %c0_152, %c0_153] : memref<2x32x64xf32, #tpu.memory_space<vmem>>, vector<1x32x64xf32>
    %285 = vector.shape_cast %284 : vector<1x32x64xf32> to vector<32x64xf32>
    %cst_154 = arith.constant dense<0.000000e+00> : vector<8x64xf32>
    %286 = tpu.matmul %283, %285, %cst_154 {dimension_numbers = #tpu.dot_dimension_numbers<[1], [0], [0], [1], [0, 0, 1, 1], [], []>} : vector<8x32xf32>, vector<32x64xf32>, vector<8x64xf32> -> vector<8x64xf32>
    %c1_155 = arith.constant 1 : index
    %c0_156 = arith.constant 0 : index
    %287 = vector.load %arg13[%c1_155, %c0_156] : memref<2x64xf32, #tpu.memory_space<vmem>>, vector<1x64xf32>
    %288 = vector.broadcast %287 : vector<1x64xf32> to vector<8x64xf32>
    %289 = arith.addf %286, %288 : vector<8x64xf32>
    %290 = arith.mulf %289, %289 : vector<8x64xf32>
    %291 = arith.mulf %289, %290 : vector<8x64xf32>
    %cst_157 = arith.constant 4.471500e-02 : f32
    %292 = vector.broadcast %cst_157 : f32 to vector<8x64xf32>
    %293 = arith.mulf %292, %291 : vector<8x64xf32>
    %294 = arith.addf %289, %293 : vector<8x64xf32>
    %cst_158 = arith.constant 0.797884583 : f32
    %295 = vector.broadcast %cst_158 : f32 to vector<8x64xf32>
    %296 = arith.mulf %295, %294 : vector<8x64xf32>
    %297 = math.tanh %296 : vector<8x64xf32>
    %cst_159 = arith.constant 1.000000e+00 : f32
    %298 = vector.broadcast %cst_159 : f32 to vector<8x64xf32>
    %299 = arith.addf %298, %297 : vector<8x64xf32>
    %cst_160 = arith.constant 5.000000e-01 : f32
    %300 = vector.broadcast %cst_160 : f32 to vector<8x64xf32>
    %301 = arith.mulf %300, %299 : vector<8x64xf32>
    %302 = arith.mulf %289, %301 : vector<8x64xf32>
    %c1_161 = arith.constant 1 : index
    %c0_162 = arith.constant 0 : index
    %c0_163 = arith.constant 0 : index
    %303 = vector.load %arg14[%c1_161, %c0_162, %c0_163] : memref<2x64x32xf32, #tpu.memory_space<vmem>>, vector<1x64x32xf32>
    %304 = vector.shape_cast %303 : vector<1x64x32xf32> to vector<64x32xf32>
    %cst_164 = arith.constant dense<0.000000e+00> : vector<8x32xf32>
    %305 = tpu.matmul %302, %304, %cst_164 {dimension_numbers = #tpu.dot_dimension_numbers<[1], [0], [0], [1], [0, 0, 1, 1], [], []>} : vector<8x64xf32>, vector<64x32xf32>, vector<8x32xf32> -> vector<8x32xf32>
    %c1_165 = arith.constant 1 : index
    %c0_166 = arith.constant 0 : index
    %306 = vector.load %arg15[%c1_165, %c0_166] : memref<2x32xf32, #tpu.memory_space<vmem>>, vector<1x32xf32>
    %307 = vector.broadcast %306 : vector<1x32xf32> to vector<8x32xf32>
    %308 = arith.addf %305, %307 : vector<8x32xf32>
    %309 = arith.addf %259, %308 : vector<8x32xf32>
    %310 = vector.extract_strided_slice %309 {offsets = [0, 0], sizes = [1, 32], strides = [1, 1]} : vector<8x32xf32> to vector<1x32xf32>
    %c0_167 = arith.constant 0 : index
    %c0_168 = arith.constant 0 : index
    %311 = vector.load %arg16[%c0_167, %c0_168] : memref<1x32xf32, #tpu.memory_space<vmem>>, vector<1x32xf32>
    %c0_169 = arith.constant 0 : index
    %c0_170 = arith.constant 0 : index
    %312 = vector.load %arg17[%c0_169, %c0_170] : memref<1x32xf32, #tpu.memory_space<vmem>>, vector<1x32xf32>
    %cst_171 = arith.constant dense<0.000000e+00> : vector<1xf32>
    %313 = vector.multi_reduction <add>, %310, %cst_171 [1] : vector<1x32xf32> to vector<1xf32>
    %314 = vector.shape_cast %313 : vector<1xf32> to vector<1x1xf32>
    %cst_172 = arith.constant 3.200000e+01 : f32
    %315 = vector.broadcast %cst_172 : f32 to vector<1x1xf32>
    %316 = arith.divf %314, %315 : vector<1x1xf32>
    %317 = vector.broadcast %316 : vector<1x1xf32> to vector<1x32xf32>
    %318 = arith.subf %310, %317 : vector<1x32xf32>
    %319 = arith.mulf %318, %318 : vector<1x32xf32>
    %cst_173 = arith.constant dense<0.000000e+00> : vector<1xf32>
    %320 = vector.multi_reduction <add>, %319, %cst_173 [1] : vector<1x32xf32> to vector<1xf32>
    %321 = vector.shape_cast %320 : vector<1xf32> to vector<1x1xf32>
    %cst_174 = arith.constant 3.200000e+01 : f32
    %322 = vector.broadcast %cst_174 : f32 to vector<1x1xf32>
    %323 = arith.divf %321, %322 : vector<1x1xf32>
    %324 = vector.broadcast %316 : vector<1x1xf32> to vector<1x32xf32>
    %325 = arith.subf %310, %324 : vector<1x32xf32>
    %cst_175 = arith.constant 9.99999996E-13 : f32
    %326 = vector.broadcast %cst_175 : f32 to vector<1x1xf32>
    %327 = arith.addf %323, %326 : vector<1x1xf32>
    %328 = math.rsqrt %327 : vector<1x1xf32>
    %329 = vector.broadcast %328 : vector<1x1xf32> to vector<1x32xf32>
    %330 = arith.mulf %325, %329 : vector<1x32xf32>
    %331 = arith.mulf %330, %311 : vector<1x32xf32>
    %332 = arith.addf %331, %312 : vector<1x32xf32>
    %c0_176 = arith.constant 0 : index
    %c0_177 = arith.constant 0 : index
    %333 = vector.load %arg18[%c0_176, %c0_177] : memref<1x32xf32, #tpu.memory_space<vmem>>, vector<1x32xf32>
    %334 = arith.mulf %332, %333 : vector<1x32xf32>
    %cst_178 = arith.constant dense<0.000000e+00> : vector<1xf32>
    %335 = vector.multi_reduction <add>, %334, %cst_178 [1] : vector<1x32xf32> to vector<1xf32>
    %336 = vector.shape_cast %335 : vector<1xf32> to vector<1x1xf32>
    %c0_179 = arith.constant 0 : index
    %c0_180 = arith.constant 0 : index
    %337 = vector.load %arg19[%c0_179, %c0_180] : memref<1x1xf32, #tpu.memory_space<vmem>>, vector<1x1xf32>
    %338 = arith.addf %336, %337 : vector<1x1xf32>
    %339 = arith.negf %338 : vector<1x1xf32>
    %340 = math.exp %339 : vector<1x1xf32>
    %cst_181 = arith.constant 1.000000e+00 : f32
    %341 = vector.broadcast %cst_181 : f32 to vector<1x1xf32>
    %342 = arith.addf %341, %340 : vector<1x1xf32>
    %343 = arith.divf %341, %342 : vector<1x1xf32>
    %cst_182 = arith.constant 1.000000e+02 : f32
    %344 = vector.broadcast %cst_182 : f32 to vector<1x1xf32>
    %345 = arith.mulf %344, %343 : vector<1x1xf32>
    %346 = vector.shape_cast %345 : vector<1x1xf32> to vector<1x1x1xf32>
    %c0_183 = arith.constant 0 : index
    %c0_184 = arith.constant 0 : index
    %c0_185 = arith.constant 0 : index
    %347 = vector.load %arg20[%c0_183, %c0_184, %c0_185] : memref<1x1x1xf32, #tpu.memory_space<vmem>>, vector<1x1x1xf32>
    tpu.vector_store %arg20[%c0_183, %c0_184, %c0_185], %346 {strides = array<i32>} : memref<1x1x1xf32, #tpu.memory_space<vmem>>, vector<1x1x1xf32>,
    return
  }
  func.func @transform_0(%arg0: i32) -> (i32, i32, i32) {
    %c0_i32 = arith.constant 0 : i32
    %c0_i32_0 = arith.constant 0 : i32
    %c0_i32_1 = arith.constant 0 : i32
    return %arg0, %c0_i32, %c0_i32_0 : i32, i32, i32
  }
  func.func @transform_1(%arg0: i32) -> (i32, i32) {
    %c0_i32 = arith.constant 0 : i32
    %c0_i32_0 = arith.constant 0 : i32
    %c0_i32_1 = arith.constant 0 : i32
    return %c0_i32, %c0_i32_0 : i32, i32
  }
  func.func @transform_2(%arg0: i32) -> (i32, i32) {
    %c0_i32 = arith.constant 0 : i32
    %c0_i32_0 = arith.constant 0 : i32
    %c0_i32_1 = arith.constant 0 : i32
    return %c0_i32, %c0_i32_0 : i32, i32
  }
  func.func @transform_3(%arg0: i32) -> (i32, i32) {
    %c0_i32 = arith.constant 0 : i32
    %c0_i32_0 = arith.constant 0 : i32
    %c0_i32_1 = arith.constant 0 : i32
    return %c0_i32, %c0_i32_0 : i32, i32
  }
  func.func @transform_4(%arg0: i32) -> (i32, i32) {
    %c0_i32 = arith.constant 0 : i32
    %c0_i32_0 = arith.constant 0 : i32
    %c0_i32_1 = arith.constant 0 : i32
    return %c0_i32, %c0_i32_0 : i32, i32
  }
  func.func @transform_5(%arg0: i32) -> (i32, i32, i32, i32) {
    %c0_i32 = arith.constant 0 : i32
    %c0_i32_0 = arith.constant 0 : i32
    %c0_i32_1 = arith.constant 0 : i32
    %c0_i32_2 = arith.constant 0 : i32
    %c0_i32_3 = arith.constant 0 : i32
    return %c0_i32, %c0_i32_0, %c0_i32_1, %c0_i32_2 : i32, i32, i32, i32
  }
  func.func @transform_6(%arg0: i32) -> (i32, i32, i32) {
    %c0_i32 = arith.constant 0 : i32
    %c0_i32_0 = arith.constant 0 : i32
    %c0_i32_1 = arith.constant 0 : i32
    %c0_i32_2 = arith.constant 0 : i32
    return %c0_i32, %c0_i32_0, %c0_i32_1 : i32, i32, i32
  }
  func.func @transform_7(%arg0: i32) -> (i32, i32, i32) {
    %c0_i32 = arith.constant 0 : i32
    %c0_i32_0 = arith.constant 0 : i32
    %c0_i32_1 = arith.constant 0 : i32
    %c0_i32_2 = arith.constant 0 : i32
    return %c0_i32, %c0_i32_0, %c0_i32_1 : i32, i32, i32
  }
  func.func @transform_8(%arg0: i32) -> (i32, i32) {
    %c0_i32 = arith.constant 0 : i32
    %c0_i32_0 = arith.constant 0 : i32
    %c0_i32_1 = arith.constant 0 : i32
    return %c0_i32, %c0_i32_0 : i32, i32
  }
  func.func @transform_9(%arg0: i32) -> (i32, i32) {
    %c0_i32 = arith.constant 0 : i32
    %c0_i32_0 = arith.constant 0 : i32
    %c0_i32_1 = arith.constant 0 : i32
    return %c0_i32, %c0_i32_0 : i32, i32
  }
  func.func @transform_10(%arg0: i32) -> (i32, i32) {
    %c0_i32 = arith.constant 0 : i32
    %c0_i32_0 = arith.constant 0 : i32
    %c0_i32_1 = arith.constant 0 : i32
    return %c0_i32, %c0_i32_0 : i32, i32
  }
  func.func @transform_11(%arg0: i32) -> (i32, i32, i32) {
    %c0_i32 = arith.constant 0 : i32
    %c0_i32_0 = arith.constant 0 : i32
    %c0_i32_1 = arith.constant 0 : i32
    %c0_i32_2 = arith.constant 0 : i32
    return %c0_i32, %c0_i32_0, %c0_i32_1 : i32, i32, i32
  }
  func.func @transform_12(%arg0: i32) -> (i32, i32) {
    %c0_i32 = arith.constant 0 : i32
    %c0_i32_0 = arith.constant 0 : i32
    %c0_i32_1 = arith.constant 0 : i32
    return %c0_i32, %c0_i32_0 : i32, i32
  }
  func.func @transform_13(%arg0: i32) -> (i32, i32, i32) {
    %c0_i32 = arith.constant 0 : i32
    %c0_i32_0 = arith.constant 0 : i32
    %c0_i32_1 = arith.constant 0 : i32
    %c0_i32_2 = arith.constant 0 : i32
    return %c0_i32, %c0_i32_0, %c0_i32_1 : i32, i32, i32
  }
  func.func @transform_14(%arg0: i32) -> (i32, i32) {
    %c0_i32 = arith.constant 0 : i32
    %c0_i32_0 = arith.constant 0 : i32
    %c0_i32_1 = arith.constant 0 : i32
    return %c0_i32, %c0_i32_0 : i32, i32
  }
  func.func @transform_15(%arg0: i32) -> (i32, i32) {
    %c0_i32 = arith.constant 0 : i32
    %c0_i32_0 = arith.constant 0 : i32
    %c0_i32_1 = arith.constant 0 : i32
    return %c0_i32, %c0_i32_0 : i32, i32
  }
  func.func @transform_16(%arg0: i32) -> (i32, i32) {
    %c0_i32 = arith.constant 0 : i32
    %c0_i32_0 = arith.constant 0 : i32
    %c0_i32_1 = arith.constant 0 : i32
    return %c0_i32, %c0_i32_0 : i32, i32
  }
  func.func @transform_17(%arg0: i32) -> (i32, i32) {
    %c0_i32 = arith.constant 0 : i32
    %c0_i32_0 = arith.constant 0 : i32
    %c0_i32_1 = arith.constant 0 : i32
    return %c0_i32, %c0_i32_0 : i32, i32
  }
  func.func @transform_18(%arg0: i32) -> (i32, i32) {
    %c0_i32 = arith.constant 0 : i32
    %c0_i32_0 = arith.constant 0 : i32
    %c0_i32_1 = arith.constant 0 : i32
    return %c0_i32, %c0_i32_0 : i32, i32
  }
  func.func @transform_19(%arg0: i32) -> (i32, i32, i32) {
    %c0_i32 = arith.constant 0 : i32
    %c0_i32_0 = arith.constant 0 : i32
    %c0_i32_1 = arith.constant 0 : i32
    return %arg0, %c0_i32, %c0_i32_0 : i32, i32, i32
  }
}

</mosaic_0001>

<bundles_post_ra>
// kernel: _lambda_.1
= control target key start
LH: loop header
LB: loop body
LE: loop exit
PB: predicated region body
PF: predicated region fallthrough
CT: control target
= control target key end

     0   :  { %s1786_s20 = smov 0   ;;  %s2229_s0 = inlined_call_operand.vmem [shape: f32[2,8,192], index: 0, kind: input, shape index: {}]   ;;  %s2230_s1 = inlined_call_operand.vmem [shape: f32[192,32], index: 1, kind: input, shape index: {}]   ;;  %s2231_s2 = inlined_call_operand.vmem [shape: f32[8,32], index: 2, kind: input, shape index: {}]   ;;  %s2232_s3 = inlined_call_operand.vmem [shape: f32[2,32], index: 3, kind: input, shape index: {}]   ;;  %s2233_s4 = inlined_call_operand.vmem [shape: f32[2,32], index: 4, kind: input, shape index: {}]   ;;  %s2234_s5 = inlined_call_operand.vmem [shape: f32[2,3,32,32], index: 5, kind: input, shape index: {}]   ;;  %s2235_s6 = inlined_call_operand.vmem [shape: f32[2,3,32], index: 6, kind: input, shape index: {}]   ;;  %s2236_s7 = inlined_call_operand.vmem [shape: f32[2,32,32], index: 7, kind: input, shape index: {}]   ;;  %s2237_s8 = inlined_call_operand.vmem [shape: f32[2,32], index: 8, kind: input, shape index: {}]   ;;  %s2238_s9 = inlined_call_operand.vmem [shape: f32[2,32], index: 9, kind: input, shape index: {}]   ;;  %s2239_s10 = inlined_call_operand.vmem [shape: f32[2,32], index: 10, kind: input, shape index: {}]   ;;  %s2240_s11 = inlined_call_operand.vmem [shape: f32[2,32,64], index: 11, kind: input, shape index: {}]   ;;  %s2241_s12 = inlined_call_operand.vmem [shape: f32[2,64], index: 12, kind: input, shape index: {}]   ;;  %s2242_s13 = inlined_call_operand.vmem [shape: f32[2,64,32], index: 13, kind: input, shape index: {}]   ;;  %s2243_s14 = inlined_call_operand.vmem [shape: f32[2,32], index: 14, kind: input, shape index: {}]   ;;  %s2244_s15 = inlined_call_operand.vmem [shape: f32[1,32], index: 15, kind: input, shape index: {}]   ;;  %s2245_s16 = inlined_call_operand.vmem [shape: f32[1,32], index: 16, kind: input, shape index: {}]   ;;  %s2246_s17 = inlined_call_operand.vmem [shape: f32[1,32], index: 17, kind: input, shape index: {}]   ;;  %s2247_s18 = inlined_call_operand.<no memory space> [shape: f32[1,1], index: 18, kind: input, shape index: {}]   ;;  %s2248_s19 = inlined_call_operand.vmem [shape: f32[2,1,1], index: 19, kind: output, shape index: {}]  }
   0x1   :  { %2251 = sst [smem:[#allocation3_spill]] %s2229_s0  ;;  %v24_v0 = vstv %s2247_s18 }
   0x2   :  { %2252 = sst [smem:[#allocation4_spill]] %s2230_s1  ;;  %25 = vst [vmem:[#allocation2] sm:$0x1] %v24_v0 }
   0x3   :  { %2253 = sst [smem:[#allocation5_spill]] %s2231_s2 }
   0x4   :  { %2254 = sst [smem:[#allocation6_spill]] %s2232_s3 }
   0x5 LB: > { %s1530_s21 = sadd.s32 4294967295, %s1680_s20   ;;  %p1534_p0 = scmp.ge.s32.totalorder %s1680_s20, 1  ;;  %s1680_s20 = sphi %s1786_s20, %s31_s20  }
   0x6   : > { %p539_p1 = scmp.lt.s32.totalorder %s1680_s20, 3 }
   0x8   : > { %p540_p2 = pnand %p1534_p0, %p539_p1 }
   0x9   : > { %s2255_s2 = sld [smem:[#allocation4_spill]] (!%p540_p2)  ;;  %p593_p3 = scmp.lt.s32.totalorder (!%p540_p2), %s1530_s21, 1 }
   0xa   : > { %543 = sbr.rel (%p540_p2) target bundleno = 3834 (0xefa), region = 96  ;;  %s2256_s28 = sld [smem:[#allocation3_spill]] (!%p540_p2) }
   0xf   : > { %v618_v1 = vld [vmem:[%s2255_s2 + $0x78] sm:$0xff]  ;;  %v617_v2 = vld [vmem:[%s2255_s2 + $0x70] sm:$0xff]  ;;  %v616_v3 = vld [vmem:[%s2255_s2 + $0x68] sm:$0xff]  ;;  %s2262_s21 = smov (!%p593_p3, %s1530_s21), 1  ;;  %vm628_vm0 = vcmask 523264   ;;  %vm683_vm1 = vcmask 261120  }
  0x10   : > { %632 = vmatpush.msra.mxu0 %v618_v1  ;;  %v626_v4 = vld [vmem:[%s2255_s2 + $0xb8] sm:$0xff]  ;;  %v615_v5 = vld [vmem:[%s2255_s2 + $0x60] sm:$0xff]  ;;  %v625_v6 = vld [vmem:[%s2255_s2 + $0xb0] sm:$0xff]  ;;  %s1608_s0 = sshll.u32 %s2262_s21, 4  ;;  %v1682_v33 = vmov 32.0   ;;  %vm830_vm11 = vcmask 64512   ;;  %s600_s26 = scalar_lea.vmem %s2248_s19, %s2262_s21 }
  0x11   : > { %660 = vmatpush.msra.mxu1 %v626_v4  ;;  %v624_v7 = vld [vmem:[%s2255_s2 + $0xa8] sm:$0xff]  ;;  %v614_v8 = vld [vmem:[%s2255_s2 + $0x58] sm:$0xff]  ;;  %v623_v9 = vld [vmem:[%s2255_s2 + $0xa0] sm:$0xff]  ;;  %s597_s29 = scalar_lea.vmem %s2256_s28, %s1608_s0  ;;  %s2257_s0 = sld [smem:[#allocation5_spill]]  ;;  %1638 = vrcp.f32 %v1682_v33 }
  0x12   : > { %633 = vmatpush.msra.mxu0 %v617_v2  ;;  %v613_v10 = vld [vmem:[%s2255_s2 + $0x50] sm:$0xff]  ;;  %v612_v11 = vld [vmem:[%s2255_s2 + $0x48] sm:$0xff]  ;;  %v622_v12 = vld [vmem:[%s2255_s2 + $0x98] sm:$0xff] }
  0x13   : > { %661 = vmatpush.msra.mxu1 %v625_v6  ;;  %v621_v13 = vld [vmem:[%s2255_s2 + $0x90] sm:$0xff]  ;;  %v611_v14 = vld [vmem:[%s2255_s2 + $0x40] sm:$0xff]  ;;  %v620_v15 = vld [vmem:[%s2255_s2 + $0x88] sm:$0xff] }
  0x14   : > { %634 = vmatpush.msra.mxu0 %v616_v3  ;;  %v610_v16 = vld [vmem:[%s2255_s2 + $0x38] sm:$0xff]  ;;  %v619_v17 = vld [vmem:[%s2255_s2 + $0x80] sm:$0xff]  ;;  %v609_v18 = vld [vmem:[%s2255_s2 + $0x30] sm:$0xff] }
  0x15   : > { %662 = vmatpush.msra.mxu1 %v624_v7  ;;  %v602_v19 = vld [vmem:[%s597_s29 + $0x8] sm:$0xff]  ;;  %v607_v21 = vld [vmem:[%s2255_s2 + $0x20] sm:$0xff]  ;;  %v606_v22 = vld [vmem:[%s2255_s2 + $0x18] sm:$0xff] }
  0x16   : > { %635 = vmatpush.msra.mxu0 %v615_v5  ;;  %v608_v20 = vld [vmem:[%s2255_s2 + $0x28] sm:$0xff]  ;;  %v605_v23 = vld [vmem:[%s2255_s2 + $0x10] sm:$0xff]  ;;  %v603_v25 = vld [vmem:[%s2255_s2] sm:$0xff] }
  0x17   : > { %663 = vmatpush.msra.mxu1 %v623_v9  ;;  %v604_v24 = vld [vmem:[%s2255_s2 + $0x8] sm:$0xff]  ;;  %v601_v26 = vld [vmem:[%s597_s29] sm:$0xff]  ;;  %v1639_v34 = vpop.eup %1638  ;;  %v720_v45 = vld [vmem:[%s2234_s5 + $0x18] sm:$0xff]  ;;  %s2258_s29 = sld [smem:[#allocation6_spill]] }
  0x18   : > { %636 = vmatpush.msra.mxu0 %v614_v8  ;;  %v627_v27 = vld [vmem:[%s2257_s0] sm:$0xff]  ;;  %v688_v35 = vmul.f32 32.0, %v1639_v34  ;;  %vm692_vm2 = vweird.f32 %v1639_v34  ;;  %v1547_v46 = vld [vmem:[%s2234_s5 + $0x58] sm:$0xff]  ;;  %738 = vmatpush.msra.mxu3 %v720_v45  ;;  %v719_v47 = vld [vmem:[%s2234_s5 + $0x10] sm:$0xff]  ;;  %v672_v8 = vlaneseq }
  0x19   : > { %664 = vmatpush.msra.mxu1 %v622_v12  ;;  %792 = vmatpush.msra.mxu2 %v1547_v46  ;;  %v1546_v48 = vld [vmem:[%s2234_s5 + $0x50] sm:$0xff]  ;;  %v718_v49 = vld [vmem:[%s2234_s5 + $0x8] sm:$0xff]  ;;  %v717_v51 = vld [vmem:[%s2234_s5] sm:$0xff] }
  0x1a   : > { %637 = vmatpush.msra.mxu0 %v613_v10  ;;  %v689_v36 = vsub.f32 1.0, %v688_v35  ;;  %v1545_v50 = vld [vmem:[%s2234_s5 + $0x48] sm:$0xff]  ;;  %739 = vmatpush.msra.mxu3 %v719_v47  ;;  %v1544_v52 = vld [vmem:[%s2234_s5 + $0x40] sm:$0xff]  ;;  %v1542_v53 = vld [vmem:[%s2234_s5 + $0x38] sm:$0xff]  ;;  %v1931_v9 = vand.u32 127, %v672_v8 }
  0x1b   : > { %665 = vmatpush.msra.mxu1 %v621_v13  ;;  %793 = vmatpush.msra.mxu2 %v1546_v48  ;;  %v1541_v54 = vld [vmem:[%s2234_s5 + $0x30] sm:$0xff]  ;;  %v1540_v55 = vld [vmem:[%s2234_s5 + $0x28] sm:$0xff]  ;;  %v1539_v58 = vld [vmem:[%s2234_s5 + $0x20] sm:$0xff] }
  0x1c   : > { %638 = vmatpush.msra.mxu0 %v612_v11  ;;  %v690_v37 = vmul.f32 %v1639_v34, %v689_v36  ;;  %740 = vmatpush.msra.mxu3 %v718_v49  ;;  %v1619_v5 = vld [vmem:[%s2233_s4] ss:$0 sm:$0xff]  ;;  %vm678_vm6 = vcmp.ge.s32.totalorder %v1931_v9, 16  ;;  %vm679_vm7 = vcmp.lt.s32.totalorder %v1931_v9, 32  ;;  %v1621_v10 = vld [vmem:[%s2235_s6 + $0x2] ss:$0 sm:$0xff] }
  0x1d   : > { %666 = vmatpush.msra.mxu1 %v620_v15  ;;  %794 = vmatpush.msra.mxu2 %v1545_v50  ;;  %v1618_v2 = vld [vmem:[%s2258_s29] ss:$0 sm:$0xff]  ;;  %vm1938_vm8 = vmand %vm678_vm6, %vm679_vm7  ;;  %vm676_vm9 = vcmp.lt.s32.totalorder %v1931_v9, 16  ;;  %vm674_vm10 = vcmp.lt.s32.totalorder %v1931_v9, 5  ;;  %v929_v48 = vld [vmem:[%s2236_s7 + $0x18] sm:$0xff] }
  0x1e   : > { %639 = vmatpush.msra.mxu0 %v611_v14  ;;  %v691_v38 = vadd.f32 %v1639_v34, %v690_v37  ;;  %741 = vmatpush.msra.mxu3 %v717_v51  ;;  %v1620_v15 = vld [vmem:[%s2235_s6] ss:$0 sm:$0xff]  ;;  %v928_v49 = vld [vmem:[%s2236_s7 + $0x10] sm:$0xff]  ;;  %v927_v50 = vld [vmem:[%s2236_s7 + $0x8] sm:$0xff] }
  0x1f   : > { %667 = vmatpush.msra.mxu1 %v619_v17  ;;  %795 = vmatpush.msra.mxu2 %v1544_v52  ;;  %v926_v51 = vld [vmem:[%s2236_s7] sm:$0xff] }
  0x20   : > { %640 = vmatpush.msra.mxu0 %v610_v16  ;;  %1537 = vmatmul.msk.f32.vlgmr.msra.gmra.mxu1 %vm628_vm0, %v602_v19  ;;  %v1880_v39 = vsel %vm692_vm2, %v1639_v34, %v691_v38  ;;  %v1622_v16 = vld [vmem:[%s2235_s6 + $0x1] ss:$0 sm:$0xff] }
  0x21   : > { %765 = vmatpush.msrb.mxu3 %v1542_v53 }
  0x22   : > { %641 = vmatpush.msra.mxu0 %v609_v18 }
  0x23   : > { %766 = vmatpush.msrb.mxu3 %v1541_v54 }
  0x24   : > { %642 = vmatpush.msra.mxu0 %v608_v20 }
  0x25   : > { %767 = vmatpush.msrb.mxu3 %v1540_v55  ;;  %v1623_v55 = vld [vmem:[%s2237_s8] ss:$0 sm:$0xff] }
  0x26   : > { %643 = vmatpush.msra.mxu0 %v607_v21 }
  0x27   : > { %768 = vmatpush.msrb.mxu3 %v1539_v58 }
  0x28   : > { %644 = vmatpush.msra.mxu0 %v606_v22 }
  0x2a   : > { %645 = vmatpush.msra.mxu0 %v605_v23 }
  0x2c   : > { %646 = vmatpush.msra.mxu0 %v604_v24 }
  0x2e   : > { %647 = vmatpush.msra.mxu0 %v603_v25 }
  0x2f   : > { %648 = vmatmul.f32.vlgmr.msra.gmra.mxu0 %v601_v26 }
  0x9d   : > { %v669_v29 = vpop.f32.mrf.mxu1 }
  0xac   : > { %v649_v28 = vpop.f32.mrf.mxu0 }
  0xad   : > { %v650_v30 = vadd.f32 %v649_v28, %v627_v27 }
  0xaf   : > { %v1876_v31 = vadd.f32 %v669_v29, %v650_v30 }
  0xb1   : > { %v684_v32 = vsel %vm683_vm1, %v1876_v31, 0.0 }
  0xb2   : > { %685 = vadd.xlane.f32.xlu0 %v684_v32 }
 0x125   : > { %v686_v40 = vpop.xlane.xlu0 %685 }
 0x126   : > { %v694_v41 = vmul.f32 %v1880_v39, %v686_v40 }
 0x128   : > { %v695_v42 = vsub.f32 %v1876_v31, %v694_v41 }
 0x12a   : > { %v696_v43 = vmul.f32 %v695_v42, %v695_v42 }
 0x12c   : > { %v697_v44 = vsel %vm683_vm1, %v696_v43, 0.0 }
 0x12d   : > { %698 = vadd.xlane.f32.xlu0 %v697_v44 }
 0x1a0   : > { %v699_v56 = vpop.xlane.xlu0 %698 }
 0x1a1   : > { %v700_v57 = vmul.f32 %v699_v56, %v1880_v39 }
 0x1a3   : > { %v701_v59 = vadd.f32 1e-12, %v700_v57 }
 0x1a5   : > { %1640 = vrsqrt.f32 %v701_v59  ;;  %vm708_vm4 = vweird.f32 %v701_v59 }
 0x1ab   : > { %v1641_v60 = vpop.eup %1640 }
 0x1ac   : > { %v703_v61 = vmul.f32 %v1641_v60, %v701_v59  ;;  %vm709_vm3 = vweird.f32 %v1641_v60 }
 0x1ad   : > { %vm710_vm5 = vmor %vm708_vm4, %vm709_vm3 }
 0x1ae   : > { %v704_v62 = vmul.f32 %v1641_v60, %v703_v61 }
 0x1b0   : > { %v705_v63 = vmul.f32 0.5, %v704_v62 }
 0x1b2   : > { %v706_v0 = vsub.f32 1.5, %v705_v63 }
 0x1b4   : > { %v707_v1 = vmul.f32 %v1641_v60, %v706_v0 }
 0x1b6   : > { %v711_v3 = vsel %vm710_vm5, %v1641_v60, %v707_v1  ;;  %v987_v1 = vld [vmem:[%s2240_s11 + $0x18] sm:$0xff] }
 0x1b7   : > { %v712_v4 = vmul.f32 %v711_v3, %v695_v42  ;;  %v984_v3 = vld [vmem:[%s2240_s11] sm:$0xff] }
 0x1b9   : > { %v714_v6 = vmul.f32 %v1618_v2, %v712_v4  ;;  %v985_v2 = vld [vmem:[%s2240_s11 + $0x8] sm:$0xff] }
 0x1bb   : > { %v716_v7 = vadd.f32 %v1619_v5, %v714_v6 }
 0x1bd   : > { %1538 = vmatmul.msk.f32.vlgmr.msra.gmra.mxu3 %vm683_vm1, %v716_v7  ;;  %1548 = vmatmul.msk.f32.vlgmr.msra.gmra.mxu2 %vm683_vm1, %v716_v7 }
 0x1c5   : > { %1543 = vmatmul.msk.f32.vlgmr.msrb.gmra.mxu3 %vm683_vm1, %v716_v7 }
 0x240   : > { %v743_v12 = vpop.f32.mrf.mxu3  ;;  %v797_v13 = vpop.f32.mrf.mxu2 }
 0x241   : > { %v798_v14 = vadd.f32 %v1621_v10, %v797_v13  ;;  %v744_v18 = vadd.f32 %v1620_v15, %v743_v12  ;;  %v1624_v15 = vld [vmem:[%s2238_s9] ss:$0 sm:$0xff] }
 0x243   : > { %1553 = vmatpush.msk.msrb.mxu2 %vm1938_vm8, %v798_v14  ;;  %v800_v20 = vsel %vm676_vm9, %v744_v18, 0.0  ;;  %v842_v21 = vsel %vm1938_vm8, %v744_v18, 0.0  ;;  %v1625_v18 = vld [vmem:[%s2239_s10] ss:$0 sm:$0xff] }
 0x245   : > { %1005 = vmatpush.msra.mxu2 %v987_v1 }
 0x248   : > { %v770_v17 = vpop.f32.mrf.mxu3 }
 0x249   : > { %v771_v19 = vadd.f32 %v1622_v16, %v770_v17 }
 0x24b   : > { %1549 = vmatpush.xpose.msk.msra.mxu3 %vm683_vm1, %v771_v19  ;;  %1551 = vmatpush.xpose.msk.msrb.mxu1 %vm683_vm1, %v771_v19 }
 0x24e   : > { %1550 = vmatmul.msk.f32.vlgmr.msra.gmra.mxu3 %vm683_vm1, %v800_v20  ;;  %1552 = vmatmul.msk.f32.vlgmr.msrb.gmra.mxu1 %vm683_vm1, %v842_v21  ;;  %v1029_v21 = vld [vmem:[%s2242_s13 + $0x38] sm:$0xff] }
 0x24f   : > { %1555 = vmatpush.msk.msrb.mxu3 %vm676_vm9, %v798_v14  ;;  %947 = vmatpush.msra.mxu1 %v929_v48 }
 0x251   : > { %948 = vmatpush.msra.mxu1 %v928_v49  ;;  %1043 = vmatpush.msra.mxu3 %v1029_v21 }
 0x253   : > { %949 = vmatpush.msra.mxu1 %v927_v50 }
 0x255   : > { %950 = vmatpush.msra.mxu1 %v926_v51 }
 0x2cb   : > { %v864_v24 = vpop.f32.mrf.mxu1 }
 0x2cc   : > { %v867_v27 = vmul.f32 0.25, %v864_v24  ;;  %v1026_v24 = vld [vmem:[%s2242_s13 + $0x20] sm:$0xff] }
 0x2ce   : > { %v868_v28 = vsel %vm674_vm10, %v867_v27, -1e+30  ;;  %v1023_v27 = vld [vmem:[%s2242_s13 + $0x8] sm:$0xff] }
 0x2cf   : > { %v869_v29 = vsel %vm830_vm11, %v868_v28, -inf }
 0x2d1   : > { %v825_v22 = vpop.f32.mrf.mxu3 }
 0x2d2   : > { %v828_v23 = vmul.f32 0.25, %v825_v22  ;;  %v1028_v22 = vld [vmem:[%s2242_s13 + $0x30] sm:$0xff] }
 0x2d3   : > { %1044 = vmatpush.msra.mxu3 %v1028_v22 }
 0x2d4   : > { %v829_v25 = vsel %vm674_vm10, %v828_v23, -1e+30  ;;  %v1027_v23 = vld [vmem:[%s2242_s13 + $0x28] sm:$0xff] }
 0x2d5   : > { %v831_v26 = vsel %vm830_vm11, %v829_v25, -inf  ;;  %1045 = vmatpush.msra.mxu3 %v1027_v23  ;;  %v1632_v23 = vld [vmem:[%s2235_s6 + $0x6] ss:$0 sm:$0xff] }
 0x2d6   : > { %832 = vmax.xlane.f32.xlu1 %v831_v26  ;;  %v1024_v26 = vld [vmem:[%s2242_s13 + $0x10] sm:$0xff] }
 0x2d7   : > { %1046 = vmatpush.msra.mxu3 %v1026_v24 }
 0x2de   : > { %870 = vmax.xlane.f32.xlu1 %v869_v29  ;;  %v1626_v29 = vld [vmem:[%s2241_s12] ss:$0 sm:$0xff] }
 0x349   : > { %v833_v30 = vpop.xlane.xlu1 %832 }
 0x34a   : > { %v834_v32 = vsub.f32 %v829_v25, %v833_v30  ;;  %v1025_v25 = vld [vmem:[%s2242_s13 + $0x18] sm:$0xff] }
 0x34b   : > { %1047 = vmatpush.msra.mxu3 %v1025_v25 }
 0x34c   : > { %v835_v33 = vmul.f32 1.442695, %v834_v32 }
 0x34d   : > { %1048 = vmatpush.msra.mxu3 %v1024_v26 }
 0x34e   : > { %1642 = vpow2.f32 %v835_v33 }
 0x34f   : > { %1049 = vmatpush.msra.mxu3 %v1023_v27 }
 0x351   : > { %v871_v34 = vpop.xlane.xlu1 %870 }
 0x352   : > { %v872_v35 = vsub.f32 %v868_v28, %v871_v34  ;;  %v1022_v28 = vld [vmem:[%s2242_s13] sm:$0xff] }
 0x353   : > { %1050 = vmatpush.msra.mxu3 %v1022_v28 }
 0x354   : > { %v1643_v36 = vpop.eup %1642  ;;  %v873_v37 = vmul.f32 1.442695, %v872_v35 }
 0x355   : > { %v837_v38 = vsel %vm830_vm11, %v1643_v36, 0.0 }
 0x356   : > { %1644 = vpow2.f32 %v873_v37  ;;  %838 = vadd.xlane.f32.xlu2 %v837_v38 }
 0x35c   : > { %v1645_v40 = vpop.eup %1644 }
 0x35d   : > { %v875_v41 = vsel %vm830_vm11, %v1645_v40, 0.0 }
 0x35e   : > { %876 = vadd.xlane.f32.xlu2 %v875_v41 }
 0x3c9   : > { %v839_v42 = vpop.xlane.xlu2 %838 }
 0x3ca   : > { %1646 = vrcp.f32 %v839_v42 }
 0x3d0   : > { %v1647_v43 = vpop.eup %1646 }
 0x3d1   : > { %v841_v44 = vmul.f32 %v1647_v43, %v1643_v36  ;;  %v877_v45 = vpop.xlane.xlu2 %876  ;;  %v1627_v43 = vld [vmem:[%s2243_s14] ss:$0 sm:$0xff] }
 0x3d2   : > { %1648 = vrcp.f32 %v877_v45 }
 0x3d3   : > { %1556 = vmatmul.msk.f32.vlgmr.msrb.gmra.mxu3 %vm830_vm11, %v841_v44 }
 0x3d8   : > { %v1649_v46 = vpop.eup %1648 }
 0x3d9   : > { %v879_v47 = vmul.f32 %v1649_v46, %v1645_v40 }
 0x3db   : > { %1554 = vmatmul.msk.f32.vlgmr.msrb.gmra.mxu2 %vm830_vm11, %v879_v47 }
 0x456   : > { %v923_v52 = vpop.f32.mrf.mxu3 }
 0x45e   : > { %v900_v53 = vpop.f32.mrf.mxu2 }
 0x45f   : > { %v924_v54 = vadd.f32 %v923_v52, %v900_v53  ;;  %v1563_v53 = vld [vmem:[%s2234_s5 + $0x78] sm:$0xff] }
 0x460   : > { %1107 = vmatpush.msrb.mxu0 %v1563_v53 }
 0x461   : > { %1557 = vmatmul.msk.f32.vlgmr.msra.gmra.mxu1 %vm683_vm1, %v924_v54  ;;  %v1569_v54 = vld [vmem:[%s2234_s5 + $0x98] sm:$0xff] }
 0x462   : > { %1134 = vmatpush.msrb.mxu1 %v1569_v54 }
 0x4de   : > { %v952_v56 = vpop.f32.mrf.mxu1 }
 0x4df   : > { %v953_v57 = vadd.f32 %v1623_v55, %v952_v56  ;;  %v1575_v55 = vld [vmem:[%s2234_s5 + $0xb8] sm:$0xff]  ;;  %v1562_v56 = vld [vmem:[%s2234_s5 + $0x70] sm:$0xff] }
 0x4e0   : > { %1108 = vmatpush.msrb.mxu0 %v1562_v56  ;;  %v1586_v56 = vld [vmem:[%s2236_s7 + $0x20] sm:$0xff] }
 0x4e1   : > { %v1989_v58 = vadd.f32 %v953_v57, %v1876_v31  ;;  %v986_v31 = vld [vmem:[%s2240_s11 + $0x10] sm:$0xff] }
 0x4e2   : > { %1006 = vmatpush.msra.mxu2 %v986_v31  ;;  %v1568_v57 = vld [vmem:[%s2234_s5 + $0x90] sm:$0xff] }
 0x4e3   : > { %v958_v59 = vsel %vm683_vm1, %v1989_v58, 0.0  ;;  %1135 = vmatpush.msrb.mxu1 %v1568_v57 }
 0x4e4   : > { %959 = vadd.xlane.f32.xlu0 %v958_v59  ;;  %1007 = vmatpush.msra.mxu2 %v985_v2  ;;  %v1561_v59 = vld [vmem:[%s2234_s5 + $0x68] sm:$0xff] }
 0x4e5   : > { %1109 = vmatpush.msrb.mxu0 %v1561_v59 }
 0x4e6   : > { %1008 = vmatpush.msra.mxu2 %v984_v3 }
 0x4e8   : > { %1161 = vmatpush.msrb.mxu2 %v1575_v55  ;;  %v1587_v55 = vld [vmem:[%s2236_s7 + $0x28] sm:$0xff] }
 0x557   : > { %v960_v60 = vpop.xlane.xlu0 %959 }
 0x558   : > { %v961_v61 = vmul.f32 %v960_v60, %v1880_v39  ;;  %v1567_v60 = vld [vmem:[%s2234_s5 + $0x88] sm:$0xff] }
 0x559   : > { %1136 = vmatpush.msrb.mxu1 %v1567_v60  ;;  %v1633_v60 = vld [vmem:[%s2237_s8 + $0x1] ss:$0 sm:$0xff] }
 0x55a   : > { %v962_v62 = vsub.f32 %v1989_v58, %v961_v61  ;;  %v1573_v61 = vld [vmem:[%s2234_s5 + $0xa8] sm:$0xff] }
 0x55c   : > { %v963_v63 = vmul.f32 %v962_v62, %v962_v62 }
 0x55e   : > { %v964_v0 = vsel %vm683_vm1, %v963_v63, 0.0  ;;  %v1566_v63 = vld [vmem:[%s2234_s5 + $0x80] sm:$0xff] }
 0x55f   : > { %965 = vadd.xlane.f32.xlu1 %v964_v0  ;;  %v1572_v0 = vld [vmem:[%s2234_s5 + $0xa0] sm:$0xff]  ;;  %1137 = vmatpush.msrb.mxu1 %v1566_v63 }
 0x5d2   : > { %v966_v4 = vpop.xlane.xlu1 %965 }
 0x5d3   : > { %v967_v5 = vmul.f32 %v966_v4, %v1880_v39 }
 0x5d5   : > { %v968_v6 = vadd.f32 1e-12, %v967_v5 }
 0x5d7   : > { %1650 = vrsqrt.f32 %v968_v6  ;;  %vm975_vm13 = vweird.f32 %v968_v6 }
 0x5dd   : > { %v1651_v7 = vpop.eup %1650 }
 0x5de   : > { %v970_v8 = vmul.f32 %v1651_v7, %v968_v6  ;;  %vm976_vm12 = vweird.f32 %v1651_v7 }
 0x5df   : > { %vm977_vm14 = vmor %vm975_vm13, %vm976_vm12  ;;  %vm1481_vm13 = vcmask 0  }
 0x5e0   : > { %v971_v10 = vmul.f32 %v1651_v7, %v970_v8 }
 0x5e2   : > { %v972_v12 = vmul.f32 0.5, %v971_v10  ;;  %v1628_v10 = vld [vmem:[%s2258_s29 + $0x1] ss:$0 sm:$0xff] }
 0x5e4   : > { %v973_v13 = vsub.f32 1.5, %v972_v12 }
 0x5e6   : > { %v974_v14 = vmul.f32 %v1651_v7, %v973_v13 }
 0x5e8   : > { %v978_v16 = vsel %vm977_vm14, %v1651_v7, %v974_v14  ;;  %v1629_v14 = vld [vmem:[%s2233_s4 + $0x1] ss:$0 sm:$0xff] }
 0x5e9   : > { %v979_v17 = vmul.f32 %v978_v16, %v962_v62  ;;  %v1560_v62 = vld [vmem:[%s2234_s5 + $0x60] sm:$0xff] }
 0x5ea   : > { %1110 = vmatpush.msrb.mxu0 %v1560_v62 }
 0x5eb   : > { %v981_v19 = vmul.f32 %v1624_v15, %v979_v17  ;;  %v1630_v17 = vld [vmem:[%s2235_s6 + $0x4] ss:$0 sm:$0xff] }
 0x5ed   : > { %v983_v20 = vadd.f32 %v1625_v18, %v981_v19  ;;  %v1631_v18 = vld [vmem:[%s2235_s6 + $0x5] ss:$0 sm:$0xff] }
 0x5ef   : > { %1558 = vmatmul.msk.f32.vlgmr.msra.gmra.mxu2 %vm683_vm1, %v983_v20 }
 0x672   : > { %v1010_v30 = vpop.f32.mrf.mxu2 }
 0x673   : > { %v1011_v32 = vadd.f32 %v1626_v29, %v1010_v30 }
 0x675   : > { %v1013_v33 = vmul.f32 %v1011_v32, %v1011_v32 }
 0x677   : > { %v1014_v34 = vmul.f32 %v1013_v33, %v1011_v32 }
 0x679   : > { %v1015_v35 = vmul.f32 0.044715, %v1014_v34 }
 0x67b   : > { %v1016_v36 = vadd.f32 %v1015_v35, %v1011_v32 }
 0x67d   : > { %v1017_v37 = vmul.f32 0.7978846, %v1016_v36 }
 0x67f   : > { %1652 = vtanh.f32 %v1017_v37 }
 0x685   : > { %v1653_v38 = vpop.eup %1652 }
 0x686   : > { %v1019_v40 = vadd.f32 1.0, %v1653_v38 }
 0x688   : > { %v1020_v41 = vmul.f32 0.5, %v1019_v40 }
 0x68a   : > { %v1021_v42 = vmul.f32 %v1020_v41, %v1011_v32 }
 0x68c   : > { %1559 = vmatmul.msk.f32.vlgmr.msra.gmra.mxu3 %vm628_vm0, %v1021_v42 }
 0x70f   : > { %v1052_v44 = vpop.f32.mrf.mxu3 }
 0x710   : > { %v1053_v45 = vadd.f32 %v1627_v43, %v1052_v44 }
 0x712   : > { %v2048_v46 = vadd.f32 %v1053_v45, %v1989_v58  ;;  %v1574_v58 = vld [vmem:[%s2234_s5 + $0xb0] sm:$0xff] }
 0x713   : > { %1162 = vmatpush.msrb.mxu2 %v1574_v58 }
 0x714   : > { %v1058_v47 = vsel %vm683_vm1, %v2048_v46, 0.0 }
 0x715   : > { %1059 = vadd.xlane.f32.xlu2 %v1058_v47  ;;  %1163 = vmatpush.msrb.mxu2 %v1573_v61  ;;  %v1589_v47 = vld [vmem:[%s2236_s7 + $0x38] sm:$0xff] }
 0x717   : > { %1164 = vmatpush.msrb.mxu2 %v1572_v0 }
 0x788   : > { %v1060_v48 = vpop.xlane.xlu2 %1059 }
 0x789   : > { %v1061_v49 = vmul.f32 %v1060_v48, %v1880_v39  ;;  %v1588_v48 = vld [vmem:[%s2236_s7 + $0x30] sm:$0xff] }
 0x78b   : > { %v1062_v50 = vsub.f32 %v2048_v46, %v1061_v49 }
 0x78d   : > { %v1063_v51 = vmul.f32 %v1062_v50, %v1062_v50 }
 0x78f   : > { %v1064_v52 = vsel %vm683_vm1, %v1063_v51, 0.0 }
 0x790   : > { %1065 = vadd.xlane.f32.xlu0 %v1064_v52 }
 0x803   : > { %v1066_v1 = vpop.xlane.xlu0 %1065 }
 0x804   : > { %v1067_v31 = vmul.f32 %v1066_v1, %v1880_v39 }
 0x806   : > { %v1068_v2 = vadd.f32 1e-12, %v1067_v31 }
 0x808   : > { %1654 = vrsqrt.f32 %v1068_v2  ;;  %vm1075_vm2 = vweird.f32 %v1068_v2 }
 0x80e   : > { %v1655_v3 = vpop.eup %1654 }
 0x80f   : > { %v1070_v4 = vmul.f32 %v1655_v3, %v1068_v2  ;;  %vm1076_vm15 = vweird.f32 %v1655_v3 }
 0x810   : > { %vm1077_vm3 = vmor %vm1075_vm2, %vm1076_vm15 }
 0x811   : > { %v1071_v5 = vmul.f32 %v1655_v3, %v1070_v4 }
 0x813   : > { %v1072_v6 = vmul.f32 0.5, %v1071_v5  ;;  %v1594_v5 = vld [vmem:[%s2240_s11 + $0x38] sm:$0xff] }
 0x815   : > { %v1073_v7 = vsub.f32 1.5, %v1072_v6  ;;  %v1592_v6 = vld [vmem:[%s2240_s11 + $0x28] sm:$0xff] }
 0x817   : > { %v1074_v8 = vmul.f32 %v1655_v3, %v1073_v7  ;;  %v1591_v7 = vld [vmem:[%s2240_s11 + $0x20] sm:$0xff] }
 0x819   : > { %v1078_v12 = vsel %vm1077_vm3, %v1655_v3, %v1074_v8 }
 0x81a   : > { %v1079_v13 = vmul.f32 %v1078_v12, %v1062_v50 }
 0x81c   : > { %v1081_v15 = vmul.f32 %v1628_v10, %v1079_v13 }
 0x81e   : > { %v1083_v16 = vadd.f32 %v1629_v14, %v1081_v15 }
 0x820   : > { %1565 = vmatmul.msk.f32.vlgmr.msrb.gmra.mxu0 %vm683_vm1, %v1083_v16  ;;  %1571 = vmatmul.msk.f32.vlgmr.msrb.gmra.mxu1 %vm683_vm1, %v1083_v16 }
 0x821   : > { %1577 = vmatmul.msk.f32.vlgmr.msrb.gmra.mxu2 %vm683_vm1, %v1083_v16 }
 0x89d   : > { %v1112_v19 = vpop.f32.mrf.mxu0  ;;  %v1139_v20 = vpop.f32.mrf.mxu1 }
 0x89e   : > { %v1113_v21 = vadd.f32 %v1630_v17, %v1112_v19  ;;  %v1140_v22 = vadd.f32 %v1631_v18, %v1139_v20  ;;  %v1634_v19 = vld [vmem:[%s2238_s9 + $0x1] ss:$0 sm:$0xff] }
 0x8a0   : > { %1578 = vmatpush.xpose.msk.msra.mxu0 %vm683_vm1, %v1140_v22  ;;  %1580 = vmatpush.xpose.msk.msra.mxu1 %vm683_vm1, %v1140_v22  ;;  %v1169_v24 = vsel %vm676_vm9, %v1113_v21, 0.0  ;;  %v1210_v25 = vsel %vm1938_vm8, %v1113_v21, 0.0  ;;  %v1635_v22 = vld [vmem:[%s2239_s10 + $0x1] ss:$0 sm:$0xff] }
 0x8a3   : > { %1579 = vmatmul.msk.f32.vlgmr.msra.gmra.mxu0 %vm683_vm1, %v1169_v24  ;;  %1581 = vmatmul.msk.f32.vlgmr.msra.gmra.mxu1 %vm683_vm1, %v1210_v25  ;;  %v1603_v25 = vld [vmem:[%s2242_s13 + $0x78] sm:$0xff] }
 0x8a4   : > { %v1166_v26 = vpop.f32.mrf.mxu2  ;;  %1316 = vmatpush.msrb.mxu0 %v1589_v47  ;;  %1375 = vmatpush.msrb.mxu1 %v1594_v5 }
 0x8a5   : > { %v1167_v27 = vadd.f32 %v1632_v23, %v1166_v26  ;;  %v1602_v26 = vld [vmem:[%s2242_s13 + $0x70] sm:$0xff] }
 0x8a6   : > { %1317 = vmatpush.msrb.mxu0 %v1588_v48 }
 0x8a7   : > { %1582 = vmatpush.msk.msra.mxu2 %vm1938_vm8, %v1167_v27  ;;  %1584 = vmatpush.msk.msrb.mxu3 %vm676_vm9, %v1167_v27  ;;  %v1601_v27 = vld [vmem:[%s2242_s13 + $0x68] sm:$0xff] }
 0x8a8   : > { %1318 = vmatpush.msrb.mxu0 %v1587_v55 }
 0x8a9   : > { %1414 = vmatpush.msrb.mxu2 %v1603_v25 }
 0x8aa   : > { %1319 = vmatpush.msrb.mxu0 %v1586_v56 }
 0x8ab   : > { %1415 = vmatpush.msrb.mxu2 %v1602_v26 }
 0x8ad   : > { %1416 = vmatpush.msrb.mxu2 %v1601_v27 }
 0x920   : > { %v1194_v28 = vpop.f32.mrf.mxu0  ;;  %v1232_v29 = vpop.f32.mrf.mxu1 }
 0x921   : > { %v1197_v30 = vmul.f32 0.25, %v1194_v28  ;;  %v1235_v32 = vmul.f32 0.25, %v1232_v29  ;;  %v1600_v28 = vld [vmem:[%s2242_s13 + $0x60] sm:$0xff]  ;;  %v1599_v29 = vld [vmem:[%s2242_s13 + $0x58] sm:$0xff] }
 0x922   : > { %1417 = vmatpush.msrb.mxu2 %v1600_v28 }
 0x923   : > { %v1236_v33 = vsel %vm674_vm10, %v1235_v32, -1e+30  ;;  %v1198_v34 = vsel %vm674_vm10, %v1197_v30, -1e+30  ;;  %v1598_v30 = vld [vmem:[%s2242_s13 + $0x50] sm:$0xff]  ;;  %v1597_v32 = vld [vmem:[%s2242_s13 + $0x48] sm:$0xff] }
 0x924   : > { %v1237_v35 = vsel %vm830_vm11, %v1236_v33, -inf  ;;  %v1199_v36 = vsel %vm830_vm11, %v1198_v34, -inf  ;;  %1418 = vmatpush.msrb.mxu2 %v1599_v29 }
 0x925   : > { %1238 = vmax.xlane.f32.xlu2 %v1237_v35  ;;  %1200 = vmax.xlane.f32.xlu1 %v1199_v36 }
 0x926   : > { %1419 = vmatpush.msrb.mxu2 %v1598_v30 }
 0x928   : > { %1420 = vmatpush.msrb.mxu2 %v1597_v32 }
 0x998   : > { %v1239_v11 = vpop.xlane.xlu2 %1238  ;;  %v1201_v37 = vpop.xlane.xlu1 %1200 }
 0x999   : > { %v1240_v38 = vsub.f32 %v1236_v33, %v1239_v11  ;;  %v1202_v40 = vsub.f32 %v1198_v34, %v1201_v37  ;;  %v1596_v33 = vld [vmem:[%s2242_s13 + $0x40] sm:$0xff] }
 0x99a   : > { %1421 = vmatpush.msrb.mxu2 %v1596_v33  ;;  %v1636_v34 = vld [vmem:[%s2241_s12 + $0x1] ss:$0 sm:$0xff] }
 0x99b   : > { %v1241_v41 = vmul.f32 1.442695, %v1240_v38  ;;  %v1203_v42 = vmul.f32 1.442695, %v1202_v40 }
 0x99d   : > { %1656 = vpow2.f32 %v1241_v41 }
 0x99e   : > { %1658 = vpow2.f32 %v1203_v42 }
 0x9a3   : > { %v1657_v43 = vpop.eup %1656 }
 0x9a4   : > { %v1659_v44 = vpop.eup %1658  ;;  %v1243_v45 = vsel %vm830_vm11, %v1657_v43, 0.0 }
 0x9a5   : > { %1244 = vadd.xlane.f32.xlu1 %v1243_v45  ;;  %v1205_v9 = vsel %vm830_vm11, %v1659_v44, 0.0 }
 0x9a6   : > { %1206 = vadd.xlane.f32.xlu0 %v1205_v9  ;;  %v1637_v9 = vld [vmem:[%s2243_s14 + $0x1] ss:$0 sm:$0xff] }
 0xa18   : > { %v1245_v49 = vpop.xlane.xlu1 %1244 }
 0xa19   : > { %v1207_v50 = vpop.xlane.xlu0 %1206  ;;  %1660 = vrcp.f32 %v1245_v49 }
 0xa1a   : > { %1662 = vrcp.f32 %v1207_v50 }
 0xa1f   : > { %v1661_v51 = vpop.eup %1660 }
 0xa20   : > { %v1663_v52 = vpop.eup %1662  ;;  %v1247_v53 = vmul.f32 %v1661_v51, %v1657_v43 }
 0xa21   : > { %v1209_v54 = vmul.f32 %v1663_v52, %v1659_v44 }
 0xa22   : > { %1583 = vmatmul.msk.f32.vlgmr.msra.gmra.mxu2 %vm830_vm11, %v1247_v53 }
 0xa23   : > { %1585 = vmatmul.msk.f32.vlgmr.msrb.gmra.mxu3 %vm830_vm11, %v1209_v54 }
 0xaa5   : > { %v1268_v57 = vpop.f32.mrf.mxu2 }
 0xaa6   : > { %v1291_v58 = vpop.f32.mrf.mxu3 }
 0xaa7   : > { %v1292_v59 = vadd.f32 %v1291_v58, %v1268_v57 }
 0xaa9   : > { %1590 = vmatmul.msk.f32.vlgmr.msrb.gmra.mxu0 %vm683_vm1, %v1292_v59 }
 0xb26   : > { %v1321_v61 = vpop.f32.mrf.mxu0 }
 0xb27   : > { %v1322_v62 = vadd.f32 %v1633_v60, %v1321_v61 }
 0xb29   : > { %v2149_v63 = vadd.f32 %v1322_v62, %v2048_v46  ;;  %v1593_v46 = vld [vmem:[%s2240_s11 + $0x30] sm:$0xff] }
 0xb2a   : > { %1376 = vmatpush.msrb.mxu1 %v1593_v46 }
 0xb2b   : > { %v1327_v0 = vsel %vm683_vm1, %v2149_v63, 0.0 }
 0xb2c   : > { %1328 = vadd.xlane.f32.xlu2 %v1327_v0  ;;  %1377 = vmatpush.msrb.mxu1 %v1592_v6 }
 0xb2e   : > { %1378 = vmatpush.msrb.mxu1 %v1591_v7  ;;  %v1459_v7 = vld [vmem:[#allocation2] sm:$0x1] }
 0xb9f   : > { %v1329_v1 = vpop.xlane.xlu2 %1328 }
 0xba0   : > { %v1330_v31 = vmul.f32 %v1329_v1, %v1880_v39 }
 0xba2   : > { %v1331_v2 = vsub.f32 %v2149_v63, %v1330_v31  ;;  %v1427_v31 = vld [vmem:[%s2244_s15] sm:$0x1] }
 0xba4   : > { %v1332_v3 = vmul.f32 %v1331_v2, %v1331_v2 }
 0xba6   : > { %v1333_v4 = vsel %vm683_vm1, %v1332_v3, 0.0 }
 0xba7   : > { %1334 = vadd.xlane.f32.xlu0 %v1333_v4  ;;  %v1454_v4 = vld [vmem:[%s2246_s17] sm:$0x1] }
 0xc1a   : > { %v1335_v8 = vpop.xlane.xlu0 %1334 }
 0xc1b   : > { %v1336_v10 = vmul.f32 %v1335_v8, %v1880_v39 }
 0xc1d   : > { %v1337_v12 = vadd.f32 1e-12, %v1336_v10 }
 0xc1f   : > { %1664 = vrsqrt.f32 %v1337_v12  ;;  %vm1344_vm5 = vweird.f32 %v1337_v12 }
 0xc25   : > { %v1665_v13 = vpop.eup %1664 }
 0xc26   : > { %v1339_v14 = vmul.f32 %v1665_v13, %v1337_v12  ;;  %vm1345_vm4 = vweird.f32 %v1665_v13 }
 0xc27   : > { %vm1346_vm6 = vmor %vm1344_vm5, %vm1345_vm4 }
 0xc28   : > { %v1340_v15 = vmul.f32 %v1665_v13, %v1339_v14 }
 0xc2a   : > { %v1341_v16 = vmul.f32 0.5, %v1340_v15 }
 0xc2c   : > { %v1342_v17 = vsub.f32 1.5, %v1341_v16 }
 0xc2e   : > { %v1343_v18 = vmul.f32 %v1665_v13, %v1342_v17 }
 0xc30   : > { %v1347_v20 = vsel %vm1346_vm6, %v1665_v13, %v1343_v18 }
 0xc31   : > { %v1348_v21 = vmul.f32 %v1347_v20, %v1331_v2 }
 0xc33   : > { %v1350_v23 = vmul.f32 %v1634_v19, %v1348_v21 }
 0xc35   : > { %v1352_v24 = vadd.f32 %v1635_v22, %v1350_v23 }
 0xc37   : > { %1595 = vmatmul.msk.f32.vlgmr.msrb.gmra.mxu1 %vm683_vm1, %v1352_v24  ;;  %vm1429_vm1 = vcmask 253952  }
 0xcb4   : > { %v1380_v35 = vpop.f32.mrf.mxu1 }
 0xcb5   : > { %v1381_v36 = vadd.f32 %v1636_v34, %v1380_v35 }
 0xcb7   : > { %v1383_v11 = vmul.f32 %v1381_v36, %v1381_v36 }
 0xcb9   : > { %v1384_v37 = vmul.f32 %v1383_v11, %v1381_v36 }
 0xcbb   : > { %v1385_v38 = vmul.f32 0.044715, %v1384_v37 }
 0xcbd   : > { %v1386_v40 = vadd.f32 %v1385_v38, %v1381_v36 }
 0xcbf   : > { %v1387_v41 = vmul.f32 0.7978846, %v1386_v40 }
 0xcc1   : > { %1666 = vtanh.f32 %v1387_v41 }
 0xcc7   : > { %v1667_v42 = vpop.eup %1666 }
 0xcc8   : > { %v1389_v43 = vadd.f32 1.0, %v1667_v42 }
 0xcca   : > { %v1390_v44 = vmul.f32 0.5, %v1389_v43 }
 0xccc   : > { %v1391_v45 = vmul.f32 %v1390_v44, %v1381_v36 }
 0xcce   : > { %1604 = vmatmul.msk.f32.vlgmr.msrb.gmra.mxu2 %vm628_vm0, %v1391_v45 }
 0xd51   : > { %v1423_v47 = vpop.f32.mrf.mxu2 }
 0xd52   : > { %v1424_v48 = vadd.f32 %v1637_v9, %v1423_v47 }
 0xd54   : > { %v1426_v49 = vadd.f32 %v1424_v48, %v2149_v63 }
 0xd56   : > { %v1430_v50 = vsel %vm1429_vm1, %v1426_v49, 0.0 }
 0xd57   : > { %1431 = vadd.xlane.f32.xlu1 %v1430_v50 }
 0xdca   : > { %v1432_v51 = vpop.xlane.xlu1 %1431 }
 0xdcb   : > { %v1433_v52 = vmul.f32 %v1432_v51, %v1880_v39 }
 0xdcd   : > { %v1434_v53 = vsub.f32 %v1426_v49, %v1433_v52 }
 0xdcf   : > { %v1435_v54 = vmul.f32 %v1434_v53, %v1434_v53 }
 0xdd1   : > { %v1436_v55 = vsel %vm1429_vm1, %v1435_v54, 0.0 }
 0xdd2   : > { %1437 = vadd.xlane.f32.xlu2 %v1436_v55 }
 0xe45   : > { %v1438_v56 = vpop.xlane.xlu2 %1437 }
 0xe46   : > { %v1439_v57 = vmul.f32 %v1438_v56, %v1880_v39  ;;  %v1428_v39 = vld [vmem:[%s2245_s16] sm:$0x1] }
 0xe48   : > { %v1440_v58 = vadd.f32 1e-12, %v1439_v57 }
 0xe4a   : > { %1668 = vrsqrt.f32 %v1440_v58  ;;  %vm1447_vm7 = vweird.f32 %v1440_v58 }
 0xe50   : > { %v1669_v59 = vpop.eup %1668 }
 0xe51   : > { %v1442_v60 = vmul.f32 %v1669_v59, %v1440_v58  ;;  %vm1448_vm0 = vweird.f32 %v1669_v59 }
 0xe52   : > { %vm1449_vm8 = vmor %vm1447_vm7, %vm1448_vm0 }
 0xe53   : > { %v1443_v61 = vmul.f32 %v1669_v59, %v1442_v60 }
 0xe55   : > { %v1444_v62 = vmul.f32 0.5, %v1443_v61 }
 0xe57   : > { %v1445_v63 = vsub.f32 1.5, %v1444_v62 }
 0xe59   : > { %v1446_v0 = vmul.f32 %v1669_v59, %v1445_v63 }
 0xe5b   : > { %v1450_v1 = vsel %vm1449_vm8, %v1669_v59, %v1446_v0 }
 0xe5c   : > { %v1451_v2 = vmul.f32 %v1450_v1, %v1434_v53 }
 0xe5e   : > { %v1452_v3 = vmul.f32 %v1451_v2, %v1427_v31 }
 0xe60   : > { %v1453_v5 = vadd.f32 %v1452_v3, %v1428_v39 }
 0xe62   : > { %v1455_v46 = vmul.f32 %v1454_v4, %v1453_v5 }
 0xe64   : > { %v1456_v6 = vsel %vm1429_vm1, %v1455_v46, 0.0 }
 0xe65   : > { %1457 = vadd.xlane.f32.xlu0 %v1456_v6 }
 0xed8   : > { %v1458_v8 = vpop.xlane.xlu0 %1457 }
 0xed9   : > { %v1460_v10 = vadd.f32 %v1459_v7, %v1458_v8 }
 0xedb   : > { %v1605_v12 = vmul.f32 -1.442695, %v1460_v10 }
 0xedd   : > { %1670 = vpow2.f32 %v1605_v12 }
 0xee3   : > { %v1671_v13 = vpop.eup %1670 }
 0xee4   : > { %v1464_v14 = vadd.f32 1.0, %v1671_v13 }
 0xee6   : > { %1672 = vrcp.f32 %v1464_v14  ;;  %v1476_v18 = vand.u32 2147483648, %v1464_v14  ;;  %v1474_v20 = vand.u32 2147483647, %v1464_v14  ;;  %vm1470_vm10 = vweird.f32 %v1464_v14 }
 0xee8   : > { %v1477_v22 = vor.u32 1.1754944e-38, %v1476_v18  ;;  %vm1475_vm12 = vcmp.eq.f32.partialorder %v1474_v20, 8.507059e+37 }
 0xeec   : > { %v1673_v15 = vpop.eup %1672 }
 0xeed   : > { %v1466_v16 = vmul.f32 %v1673_v15, %v1464_v14  ;;  %vm1471_vm9 = vweird.f32 %v1673_v15 }
 0xeee   : > { %vm1472_vm11 = vmor %vm1470_vm10, %vm1471_vm9 }
 0xeef   : > { %v1467_v17 = vsub.f32 1.0, %v1466_v16 }
 0xef1   : > { %v1468_v19 = vmul.f32 %v1673_v15, %v1467_v17 }
 0xef3   : > { %v1469_v21 = vadd.f32 %v1673_v15, %v1468_v19 }
 0xef5   : > { %v1473_v23 = vsel %vm1472_vm11, %v1673_v15, %v1469_v21 }
 0xef6   : > { %v1478_v24 = vsel %vm1475_vm12, %v1477_v22, %v1473_v23 }
 0xef7   : > { %v1480_v25 = vmul.f32 100.0, %v1478_v24 }
 0xef9   : > { %1482 = vst.msk [vmem:[%s600_s26] sm:$0x1] %vm1481_vm13, %v1480_v25 }
 0xefa PF: > { %s31_s20 = sadd.s32 1, %s1680_s20  }
 0xefb   : > { %p28_p4 = scmp.ge.s32.totalorder %s31_s20, 4  }
 0xefd   :  { %30 = sbr.rel (!%p28_p4) target bundleno = 5 (0x5), region = 135 }

</bundles_post_ra>
